<compile_context>
chip_gen: v6e
topology: v6e:2x2x1
jax: 0.10.0
libtpu: 0.0.40
codegen_flags: <defaults>
</compile_context>

<pallas_src>
import functools
import math

import jax
import jax.numpy as jnp
import numpy as np
from jax import lax
from jax.experimental import pallas as pl
from jax.experimental.pallas import tpu as pltpu


def _residual_block_kernel(x_ref, w1_ref, b1_ref, w2_ref, b2_ref, o_ref,
                           col_ref, *, H, W, C, CS, mxu_dtype):
    """One batch-slab per grid step; fully fused residual block on (C, L)."""
    L = x_ref.shape[2]                     # images_per_step * H * W (lane axis)
    HW = H * W
    x = x_ref[0]                           # (C, L), lane-dense

    # Zero the sublane pad rows of each 8-aligned tap slab (unconditional:
    # on megacore each core owns its own scratch copy, so no pl.when gating).
    if CS != C:
        for tap in range(9):
            col_ref[tap * CS + C:(tap + 1) * CS, :] = jnp.zeros(
                (CS - C, L), jnp.float32)

    # Border-validity masks computed from the PER-IMAGE lane index so rolls
    # never leak pixels across image boundaries on the packed lane axis.
    lane = lax.broadcasted_iota(jnp.int32, (1, L), 1)
    lane_img = (jnp.bitwise_and(lane, HW - 1) if HW & (HW - 1) == 0
                else lane % HW)
    w_idx = (jnp.bitwise_and(lane_img, W - 1) if W & (W - 1) == 0
             else lane_img % W)
    masks = {}
    for oh in (-1, 0, 1):
        for ow in (-1, 0, 1):
            m = None
            if oh == -1:
                m = lane_img >= W                      # h-1 >= 0
            elif oh == 1:
                m = lane_img < (H - 1) * W             # h+1 <= H-1
            if ow == -1:
                c = w_idx >= 1                         # w-1 >= 0
                m = c if m is None else (m & c)
            elif ow == 1:
                c = w_idx < (W - 1)                    # w+1 <= W-1
                m = c if m is None else (m & c)
            masks[(oh, ow)] = m

    def conv3x3(inp, w_ref):
        # Transposed im2col: 9 masked XLU lane-rolls of `inp`, each stored into
        # an 8-sublane-aligned slab of col_ref; one MXU matmul per conv.
        for oh in (-1, 0, 1):
            for ow in (-1, 0, 1):
                tap = (oh + 1) * 3 + (ow + 1)
                sh = oh * W + ow
                shifted = inp if sh == 0 else pltpu.roll(inp, (-sh) % L, axis=1)
                m = masks[(oh, ow)]
                if m is not None:
                    shifted = jnp.where(m, shifted, 0.0)
                col_ref[tap * CS:tap * CS + C, :] = shifted
        return jnp.dot(w_ref[...].astype(mxu_dtype),
                       col_ref[...].astype(mxu_dtype),
                       preferred_element_type=jnp.float32)

    # conv1 (BN1 scale folded into weights) -> +bias -> relu   (stays in VMEM)
    y1 = jnp.maximum(conv3x3(x, w1_ref) + b1_ref[...], 0.0)
    # conv2 (BN2 scale folded) -> +bias -> +residual -> relu
    y2 = conv3x3(y1, w2_ref) + b2_ref[...]
    o_ref[0] = jnp.maximum(y2 + x, 0.0)


def _fold_and_pad_weight(w_mat, scale, C, CS):
    """Fold BN scale into conv-weight rows; pad each tap slab's columns to CS."""
    w = w_mat * scale                                   # (C, 9C) * (C, 1)
    if CS == C:
        return w.astype(jnp.float32)
    w = w.reshape(C, 9, C)
    w = jnp.pad(w, ((0, 0), (0, 0), (0, CS - C)))       # zero cols for pad rows
    return w.reshape(C, 9 * CS).astype(jnp.float32)


def _num_grid_steps(N):
    """One grid step per TensorCore: 2 on v7x-class chips, else 1."""
    try:
        kind = jax.devices()[0].device_kind.lower()
    except Exception:
        return 1
    if ("v7" in kind or "7x" in kind) and N % 2 == 0 and N >= 2:
        return 2
    return 1


def residual_block(x_nchw, p1, p2, *, steps=None, mxu_dtype=jnp.float32):
    """Pallas implementation of ResidualBlock.forward (eval-mode BN)."""
    N, C, H, W = x_nchw.shape
    HW = H * W
    CS = ((C + 7) // 8) * 8                             # 8-sublane-aligned slab
    if steps is None:
        steps = _num_grid_steps(N)
    assert N % steps == 0
    nps = N // steps
    L = nps * HW

    w1_mat, _, s1, b1 = p1
    w2_mat, _, s2, b2 = p2
    w1p = _fold_and_pad_weight(w1_mat, s1, C, CS)
    w2p = _fold_and_pad_weight(w2_mat, s2, C, CS)

    # NCHW -> (steps, C, nps*HW): lane axis carries all images of a step.
    x = (x_nchw.astype(jnp.float32)
         .reshape(steps, nps, C, HW)
         .transpose(0, 2, 1, 3)
         .reshape(steps, C, L))

    kernel = functools.partial(_residual_block_kernel, H=H, W=W, C=C, CS=CS,
                               mxu_dtype=mxu_dtype)
    out = pl.pallas_call(
        kernel,
        out_shape=jax.ShapeDtypeStruct((steps, C, L), jnp.float32),
        grid=(steps,),
        in_specs=[
            pl.BlockSpec((1, C, L), lambda s: (s, 0, 0)),      # x (+ residual)
            pl.BlockSpec((C, 9 * CS), lambda s: (0, 0)),       # conv1 w (scaled)
            pl.BlockSpec((C, 1), lambda s: (0, 0)),            # bn1 folded bias
            pl.BlockSpec((C, 9 * CS), lambda s: (0, 0)),       # conv2 w (scaled)
            pl.BlockSpec((C, 1), lambda s: (0, 0)),            # bn2 folded bias
        ],
        out_specs=pl.BlockSpec((1, C, L), lambda s: (s, 0, 0)),
        scratch_shapes=[pltpu.VMEM((9 * CS, L), jnp.float32)],  # im2col columns
        compiler_params=pltpu.CompilerParams(
            dimension_semantics=("parallel",)),
    )(x, w1p, b1, w2p, b2)

    return (out.reshape(steps, C, nps, HW)
            .transpose(0, 2, 1, 3)
            .reshape(N, C, H, W))


def init_params(key, C):
    """Deterministic synthetic params; fold conv bias + eval-mode BN into scale/bias."""
    ks = jax.random.split(key, 12)

    def conv_bn(kw, kb, kg, kbe, km, kv):
        bound = 1.0 / math.sqrt(C * 9)
        w = jax.random.uniform(kw, (C, C, 3, 3), minval=-bound, maxval=bound)  # OIHW
        bconv = jax.random.uniform(kb, (C,), minval=-bound, maxval=bound)
        gamma = jax.random.uniform(kg, (C,), minval=0.5, maxval=1.5)
        beta = 0.1 * jax.random.normal(kbe, (C,))
        mean = 0.1 * jax.random.normal(km, (C,))
        var = jax.random.uniform(kv, (C,), minval=0.5, maxval=1.5)
        scale = gamma / jnp.sqrt(var + 1e-5)
        bias = (bconv - mean) * scale + beta
        # (Cout, 9*Cin) with columns ordered (dh, dw, ci) == kernel's tap*C + ci.
        w_mat = jnp.transpose(w, (0, 2, 3, 1)).reshape(C, 9 * C)
        return (w_mat.astype(jnp.float32), w.astype(jnp.float32),
                scale.reshape(C, 1).astype(jnp.float32),
                bias.reshape(C, 1).astype(jnp.float32))

    return conv_bn(*ks[0:6]), conv_bn(*ks[6:12])


def ref_forward(x_nchw, p1, p2):
    """Pure-JAX reference of the same forward pass (NCHW)."""
    x = x_nchw.astype(jnp.float32)

    def conv_bn(inp, p):
        _, w_oihw, s, b = p
        y = lax.conv_general_dilated(inp, w_oihw, (1, 1), "SAME",
                                     dimension_numbers=("NCHW", "OIHW", "NCHW"))
        return y * s.reshape(1, -1, 1, 1) + b.reshape(1, -1, 1, 1)

    y = jax.nn.relu(conv_bn(x, p1))
    y = jax.nn.relu(conv_bn(y, p2) + x)
    return y


if __name__ == "__main__":
    key = jax.random.PRNGKey(0)
    kx, kp = jax.random.split(key)
    N, C, H, W = 2, 4, 16, 16
    x = jax.random.normal(kx, (N, C, H, W), dtype=jnp.float32)
    p1, p2 = init_params(kp, C)

    out = jax.block_until_ready(residual_block(x, p1, p2))
    ref = ref_forward(x, p1, p2)
    np.testing.assert_allclose(np.asarray(out), np.asarray(ref), rtol=1e-3, atol=1e-3)
    print("KERNEL_OK")
</pallas_src>

<mosaic_0001>
module attributes {stable_mosaic.version = 11 : i64} {
  func.func @_residual_block_kernel(%arg0: i32, %arg1: memref<1x4x512xf32, #tpu.memory_space<vmem>>, %arg2: memref<4x72xf32, #tpu.memory_space<vmem>>, %arg3: memref<4x1xf32, #tpu.memory_space<vmem>>, %arg4: memref<4x72xf32, #tpu.memory_space<vmem>>, %arg5: memref<4x1xf32, #tpu.memory_space<vmem>>, %arg6: memref<1x4x512xf32, #tpu.memory_space<vmem>>, %arg7: memref<72x512xf32, #tpu.memory_space<vmem>>) attributes {dimension_semantics = [#tpu.dimension_semantics<parallel>], iteration_bounds = array<i64: 1>, scalar_prefetch = 0 : i64, scratch_operands = 1 : i64, tpu.core_type = #tpu.core_type<tc>, window_params = [{transform_indices = @transform_0, window_bounds = array<i64: 1, 4, 512>}, {pipeline_mode = #tpu.pipeline_mode<synchronous>, transform_indices = @transform_1, window_bounds = array<i64: 4, 72>}, {pipeline_mode = #tpu.pipeline_mode<synchronous>, transform_indices = @transform_2, window_bounds = array<i64: 4, 1>}, {pipeline_mode = #tpu.pipeline_mode<synchronous>, transform_indices = @transform_3, window_bounds = array<i64: 4, 72>}, {pipeline_mode = #tpu.pipeline_mode<synchronous>, transform_indices = @transform_4, window_bounds = array<i64: 4, 1>}, {transform_indices = @transform_5, window_bounds = array<i64: 1, 4, 512>}]} {
    %c0 = arith.constant 0 : index
    %c0_0 = arith.constant 0 : index
    %c0_1 = arith.constant 0 : index
    %0 = vector.load %arg1[%c0, %c0_0, %c0_1] : memref<1x4x512xf32, #tpu.memory_space<vmem>>, vector<1x4x512xf32>
    %1 = vector.shape_cast %0 : vector<1x4x512xf32> to vector<4x512xf32>
    %cst = arith.constant 0.000000e+00 : f32
    %2 = vector.broadcast %cst : f32 to vector<4x512xf32>
    %c4 = arith.constant 4 : index
    %c0_2 = arith.constant 0 : index
    %3 = vector.load %arg7[%c4, %c0_2] : memref<72x512xf32, #tpu.memory_space<vmem>>, vector<4x512xf32>
    tpu.vector_store %arg7[%c4, %c0_2], %2 {strides = array<i32>} : memref<72x512xf32, #tpu.memory_space<vmem>>, vector<4x512xf32>,
    %cst_3 = arith.constant 0.000000e+00 : f32
    %4 = vector.broadcast %cst_3 : f32 to vector<4x512xf32>
    %c12 = arith.constant 12 : index
    %c0_4 = arith.constant 0 : index
    %5 = vector.load %arg7[%c12, %c0_4] : memref<72x512xf32, #tpu.memory_space<vmem>>, vector<4x512xf32>
    tpu.vector_store %arg7[%c12, %c0_4], %4 {strides = array<i32>} : memref<72x512xf32, #tpu.memory_space<vmem>>, vector<4x512xf32>,
    %cst_5 = arith.constant 0.000000e+00 : f32
    %6 = vector.broadcast %cst_5 : f32 to vector<4x512xf32>
    %c20 = arith.constant 20 : index
    %c0_6 = arith.constant 0 : index
    %7 = vector.load %arg7[%c20, %c0_6] : memref<72x512xf32, #tpu.memory_space<vmem>>, vector<4x512xf32>
    tpu.vector_store %arg7[%c20, %c0_6], %6 {strides = array<i32>} : memref<72x512xf32, #tpu.memory_space<vmem>>, vector<4x512xf32>,
    %cst_7 = arith.constant 0.000000e+00 : f32
    %8 = vector.broadcast %cst_7 : f32 to vector<4x512xf32>
    %c28 = arith.constant 28 : index
    %c0_8 = arith.constant 0 : index
    %9 = vector.load %arg7[%c28, %c0_8] : memref<72x512xf32, #tpu.memory_space<vmem>>, vector<4x512xf32>
    tpu.vector_store %arg7[%c28, %c0_8], %8 {strides = array<i32>} : memref<72x512xf32, #tpu.memory_space<vmem>>, vector<4x512xf32>,
    %cst_9 = arith.constant 0.000000e+00 : f32
    %10 = vector.broadcast %cst_9 : f32 to vector<4x512xf32>
    %c36 = arith.constant 36 : index
    %c0_10 = arith.constant 0 : index
    %11 = vector.load %arg7[%c36, %c0_10] : memref<72x512xf32, #tpu.memory_space<vmem>>, vector<4x512xf32>
    tpu.vector_store %arg7[%c36, %c0_10], %10 {strides = array<i32>} : memref<72x512xf32, #tpu.memory_space<vmem>>, vector<4x512xf32>,
    %cst_11 = arith.constant 0.000000e+00 : f32
    %12 = vector.broadcast %cst_11 : f32 to vector<4x512xf32>
    %c44 = arith.constant 44 : index
    %c0_12 = arith.constant 0 : index
    %13 = vector.load %arg7[%c44, %c0_12] : memref<72x512xf32, #tpu.memory_space<vmem>>, vector<4x512xf32>
    tpu.vector_store %arg7[%c44, %c0_12], %12 {strides = array<i32>} : memref<72x512xf32, #tpu.memory_space<vmem>>, vector<4x512xf32>,
    %cst_13 = arith.constant 0.000000e+00 : f32
    %14 = vector.broadcast %cst_13 : f32 to vector<4x512xf32>
    %c52 = arith.constant 52 : index
    %c0_14 = arith.constant 0 : index
    %15 = vector.load %arg7[%c52, %c0_14] : memref<72x512xf32, #tpu.memory_space<vmem>>, vector<4x512xf32>
    tpu.vector_store %arg7[%c52, %c0_14], %14 {strides = array<i32>} : memref<72x512xf32, #tpu.memory_space<vmem>>, vector<4x512xf32>,
    %cst_15 = arith.constant 0.000000e+00 : f32
    %16 = vector.broadcast %cst_15 : f32 to vector<4x512xf32>
    %c60 = arith.constant 60 : index
    %c0_16 = arith.constant 0 : index
    %17 = vector.load %arg7[%c60, %c0_16] : memref<72x512xf32, #tpu.memory_space<vmem>>, vector<4x512xf32>
    tpu.vector_store %arg7[%c60, %c0_16], %16 {strides = array<i32>} : memref<72x512xf32, #tpu.memory_space<vmem>>, vector<4x512xf32>,
    %cst_17 = arith.constant 0.000000e+00 : f32
    %18 = vector.broadcast %cst_17 : f32 to vector<4x512xf32>
    %c68 = arith.constant 68 : index
    %c0_18 = arith.constant 0 : index
    %19 = vector.load %arg7[%c68, %c0_18] : memref<72x512xf32, #tpu.memory_space<vmem>>, vector<4x512xf32>
    tpu.vector_store %arg7[%c68, %c0_18], %18 {strides = array<i32>} : memref<72x512xf32, #tpu.memory_space<vmem>>, vector<4x512xf32>,
    %20 = tpu.iota {dimensions = array<i32: 1>} : vector<1x512xi32>
    %c255_i32 = arith.constant 255 : i32
    %21 = vector.broadcast %c255_i32 : i32 to vector<1x512xi32>
    %22 = arith.andi %20, %21 : vector<1x512xi32>
    %c15_i32 = arith.constant 15 : i32
    %23 = vector.broadcast %c15_i32 : i32 to vector<1x512xi32>
    %24 = arith.andi %22, %23 : vector<1x512xi32>
    %c16_i32 = arith.constant 16 : i32
    %25 = vector.broadcast %c16_i32 : i32 to vector<1x512xi32>
    %26 = arith.cmpi sge, %22, %25 : vector<1x512xi32>
    %c1_i32 = arith.constant 1 : i32
    %27 = vector.broadcast %c1_i32 : i32 to vector<1x512xi32>
    %28 = arith.cmpi sge, %24, %27 : vector<1x512xi32>
    %29 = arith.andi %26, %28 : vector<1x512xi1>
    %c16_i32_19 = arith.constant 16 : i32
    %30 = vector.broadcast %c16_i32_19 : i32 to vector<1x512xi32>
    %31 = arith.cmpi sge, %22, %30 : vector<1x512xi32>
    %c16_i32_20 = arith.constant 16 : i32
    %32 = vector.broadcast %c16_i32_20 : i32 to vector<1x512xi32>
    %33 = arith.cmpi sge, %22, %32 : vector<1x512xi32>
    %c15_i32_21 = arith.constant 15 : i32
    %34 = vector.broadcast %c15_i32_21 : i32 to vector<1x512xi32>
    %35 = arith.cmpi slt, %24, %34 : vector<1x512xi32>
    %36 = arith.andi %33, %35 : vector<1x512xi1>
    %c1_i32_22 = arith.constant 1 : i32
    %37 = vector.broadcast %c1_i32_22 : i32 to vector<1x512xi32>
    %38 = arith.cmpi sge, %24, %37 : vector<1x512xi32>
    %c15_i32_23 = arith.constant 15 : i32
    %39 = vector.broadcast %c15_i32_23 : i32 to vector<1x512xi32>
    %40 = arith.cmpi slt, %24, %39 : vector<1x512xi32>
    %c240_i32 = arith.constant 240 : i32
    %41 = vector.broadcast %c240_i32 : i32 to vector<1x512xi32>
    %42 = arith.cmpi slt, %22, %41 : vector<1x512xi32>
    %c1_i32_24 = arith.constant 1 : i32
    %43 = vector.broadcast %c1_i32_24 : i32 to vector<1x512xi32>
    %44 = arith.cmpi sge, %24, %43 : vector<1x512xi32>
    %45 = arith.andi %42, %44 : vector<1x512xi1>
    %c240_i32_25 = arith.constant 240 : i32
    %46 = vector.broadcast %c240_i32_25 : i32 to vector<1x512xi32>
    %47 = arith.cmpi slt, %22, %46 : vector<1x512xi32>
    %c240_i32_26 = arith.constant 240 : i32
    %48 = vector.broadcast %c240_i32_26 : i32 to vector<1x512xi32>
    %49 = arith.cmpi slt, %22, %48 : vector<1x512xi32>
    %c15_i32_27 = arith.constant 15 : i32
    %50 = vector.broadcast %c15_i32_27 : i32 to vector<1x512xi32>
    %51 = arith.cmpi slt, %24, %50 : vector<1x512xi32>
    %52 = arith.andi %49, %51 : vector<1x512xi1>
    %c17_i32 = arith.constant 17 : i32
    %53 = tpu.dynamic_rotate %1 by %c17_i32 dim 1 : vector<4x512xf32>, i32 -> vector<4x512xf32>
    %cst_28 = arith.constant 0.000000e+00 : f32
    %54 = vector.shape_cast %29 : vector<1x512xi1> to vector<1x512xi1>
    %55 = vector.broadcast %54 : vector<1x512xi1> to vector<4x512xi1>
    %56 = vector.broadcast %cst_28 : f32 to vector<4x512xf32>
    %57 = arith.select %55, %53, %56 : vector<4x512xi1>, vector<4x512xf32>
    %c0_29 = arith.constant 0 : index
    %c0_30 = arith.constant 0 : index
    %58 = vector.load %arg7[%c0_29, %c0_30] : memref<72x512xf32, #tpu.memory_space<vmem>>, vector<4x512xf32>
    tpu.vector_store %arg7[%c0_29, %c0_30], %57 {strides = array<i32>} : memref<72x512xf32, #tpu.memory_space<vmem>>, vector<4x512xf32>,
    %c16_i32_31 = arith.constant 16 : i32
    %59 = tpu.dynamic_rotate %1 by %c16_i32_31 dim 1 : vector<4x512xf32>, i32 -> vector<4x512xf32>
    %cst_32 = arith.constant 0.000000e+00 : f32
    %60 = vector.shape_cast %31 : vector<1x512xi1> to vector<1x512xi1>
    %61 = vector.broadcast %60 : vector<1x512xi1> to vector<4x512xi1>
    %62 = vector.broadcast %cst_32 : f32 to vector<4x512xf32>
    %63 = arith.select %61, %59, %62 : vector<4x512xi1>, vector<4x512xf32>
    %c8 = arith.constant 8 : index
    %c0_33 = arith.constant 0 : index
    %64 = vector.load %arg7[%c8, %c0_33] : memref<72x512xf32, #tpu.memory_space<vmem>>, vector<4x512xf32>
    tpu.vector_store %arg7[%c8, %c0_33], %63 {strides = array<i32>} : memref<72x512xf32, #tpu.memory_space<vmem>>, vector<4x512xf32>,
    %c15_i32_34 = arith.constant 15 : i32
    %65 = tpu.dynamic_rotate %1 by %c15_i32_34 dim 1 : vector<4x512xf32>, i32 -> vector<4x512xf32>
    %cst_35 = arith.constant 0.000000e+00 : f32
    %66 = vector.shape_cast %36 : vector<1x512xi1> to vector<1x512xi1>
    %67 = vector.broadcast %66 : vector<1x512xi1> to vector<4x512xi1>
    %68 = vector.broadcast %cst_35 : f32 to vector<4x512xf32>
    %69 = arith.select %67, %65, %68 : vector<4x512xi1>, vector<4x512xf32>
    %c16 = arith.constant 16 : index
    %c0_36 = arith.constant 0 : index
    %70 = vector.load %arg7[%c16, %c0_36] : memref<72x512xf32, #tpu.memory_space<vmem>>, vector<4x512xf32>
    tpu.vector_store %arg7[%c16, %c0_36], %69 {strides = array<i32>} : memref<72x512xf32, #tpu.memory_space<vmem>>, vector<4x512xf32>,
    %c1_i32_37 = arith.constant 1 : i32
    %71 = tpu.dynamic_rotate %1 by %c1_i32_37 dim 1 : vector<4x512xf32>, i32 -> vector<4x512xf32>
    %cst_38 = arith.constant 0.000000e+00 : f32
    %72 = vector.shape_cast %38 : vector<1x512xi1> to vector<1x512xi1>
    %73 = vector.broadcast %72 : vector<1x512xi1> to vector<4x512xi1>
    %74 = vector.broadcast %cst_38 : f32 to vector<4x512xf32>
    %75 = arith.select %73, %71, %74 : vector<4x512xi1>, vector<4x512xf32>
    %c24 = arith.constant 24 : index
    %c0_39 = arith.constant 0 : index
    %76 = vector.load %arg7[%c24, %c0_39] : memref<72x512xf32, #tpu.memory_space<vmem>>, vector<4x512xf32>
    tpu.vector_store %arg7[%c24, %c0_39], %75 {strides = array<i32>} : memref<72x512xf32, #tpu.memory_space<vmem>>, vector<4x512xf32>,
    %c32 = arith.constant 32 : index
    %c0_40 = arith.constant 0 : index
    %77 = vector.load %arg7[%c32, %c0_40] : memref<72x512xf32, #tpu.memory_space<vmem>>, vector<4x512xf32>
    tpu.vector_store %arg7[%c32, %c0_40], %1 {strides = array<i32>} : memref<72x512xf32, #tpu.memory_space<vmem>>, vector<4x512xf32>,
    %c511_i32 = arith.constant 511 : i32
    %78 = tpu.dynamic_rotate %1 by %c511_i32 dim 1 : vector<4x512xf32>, i32 -> vector<4x512xf32>
    %cst_41 = arith.constant 0.000000e+00 : f32
    %79 = vector.shape_cast %40 : vector<1x512xi1> to vector<1x512xi1>
    %80 = vector.broadcast %79 : vector<1x512xi1> to vector<4x512xi1>
    %81 = vector.broadcast %cst_41 : f32 to vector<4x512xf32>
    %82 = arith.select %80, %78, %81 : vector<4x512xi1>, vector<4x512xf32>
    %c40 = arith.constant 40 : index
    %c0_42 = arith.constant 0 : index
    %83 = vector.load %arg7[%c40, %c0_42] : memref<72x512xf32, #tpu.memory_space<vmem>>, vector<4x512xf32>
    tpu.vector_store %arg7[%c40, %c0_42], %82 {strides = array<i32>} : memref<72x512xf32, #tpu.memory_space<vmem>>, vector<4x512xf32>,
    %c497_i32 = arith.constant 497 : i32
    %84 = tpu.dynamic_rotate %1 by %c497_i32 dim 1 : vector<4x512xf32>, i32 -> vector<4x512xf32>
    %cst_43 = arith.constant 0.000000e+00 : f32
    %85 = vector.shape_cast %45 : vector<1x512xi1> to vector<1x512xi1>
    %86 = vector.broadcast %85 : vector<1x512xi1> to vector<4x512xi1>
    %87 = vector.broadcast %cst_43 : f32 to vector<4x512xf32>
    %88 = arith.select %86, %84, %87 : vector<4x512xi1>, vector<4x512xf32>
    %c48 = arith.constant 48 : index
    %c0_44 = arith.constant 0 : index
    %89 = vector.load %arg7[%c48, %c0_44] : memref<72x512xf32, #tpu.memory_space<vmem>>, vector<4x512xf32>
    tpu.vector_store %arg7[%c48, %c0_44], %88 {strides = array<i32>} : memref<72x512xf32, #tpu.memory_space<vmem>>, vector<4x512xf32>,
    %c496_i32 = arith.constant 496 : i32
    %90 = tpu.dynamic_rotate %1 by %c496_i32 dim 1 : vector<4x512xf32>, i32 -> vector<4x512xf32>
    %cst_45 = arith.constant 0.000000e+00 : f32
    %91 = vector.shape_cast %47 : vector<1x512xi1> to vector<1x512xi1>
    %92 = vector.broadcast %91 : vector<1x512xi1> to vector<4x512xi1>
    %93 = vector.broadcast %cst_45 : f32 to vector<4x512xf32>
    %94 = arith.select %92, %90, %93 : vector<4x512xi1>, vector<4x512xf32>
    %c56 = arith.constant 56 : index
    %c0_46 = arith.constant 0 : index
    %95 = vector.load %arg7[%c56, %c0_46] : memref<72x512xf32, #tpu.memory_space<vmem>>, vector<4x512xf32>
    tpu.vector_store %arg7[%c56, %c0_46], %94 {strides = array<i32>} : memref<72x512xf32, #tpu.memory_space<vmem>>, vector<4x512xf32>,
    %c495_i32 = arith.constant 495 : i32
    %96 = tpu.dynamic_rotate %1 by %c495_i32 dim 1 : vector<4x512xf32>, i32 -> vector<4x512xf32>
    %cst_47 = arith.constant 0.000000e+00 : f32
    %97 = vector.shape_cast %52 : vector<1x512xi1> to vector<1x512xi1>
    %98 = vector.broadcast %97 : vector<1x512xi1> to vector<4x512xi1>
    %99 = vector.broadcast %cst_47 : f32 to vector<4x512xf32>
    %100 = arith.select %98, %96, %99 : vector<4x512xi1>, vector<4x512xf32>
    %c64 = arith.constant 64 : index
    %c0_48 = arith.constant 0 : index
    %101 = vector.load %arg7[%c64, %c0_48] : memref<72x512xf32, #tpu.memory_space<vmem>>, vector<4x512xf32>
    tpu.vector_store %arg7[%c64, %c0_48], %100 {strides = array<i32>} : memref<72x512xf32, #tpu.memory_space<vmem>>, vector<4x512xf32>,
    %c0_49 = arith.constant 0 : index
    %c0_50 = arith.constant 0 : index
    %102 = vector.load %arg2[%c0_49, %c0_50] : memref<4x72xf32, #tpu.memory_space<vmem>>, vector<4x72xf32>
    %c0_51 = arith.constant 0 : index
    %c0_52 = arith.constant 0 : index
    %103 = vector.load %arg7[%c0_51, %c0_52] : memref<72x512xf32, #tpu.memory_space<vmem>>, vector<72x512xf32>
    %cst_53 = arith.constant dense<0.000000e+00> : vector<4x512xf32>
    %104 = tpu.matmul %102, %103, %cst_53 {dimension_numbers = #tpu.dot_dimension_numbers<[1], [0], [0], [1], [0, 0, 1, 1], [], []>} : vector<4x72xf32>, vector<72x512xf32>, vector<4x512xf32> -> vector<4x512xf32>
    %c0_54 = arith.constant 0 : index
    %c0_55 = arith.constant 0 : index
    %105 = vector.load %arg3[%c0_54, %c0_55] : memref<4x1xf32, #tpu.memory_space<vmem>>, vector<4x1xf32>
    %106 = vector.broadcast %105 : vector<4x1xf32> to vector<4x512xf32>
    %107 = arith.addf %104, %106 : vector<4x512xf32>
    %cst_56 = arith.constant 0.000000e+00 : f32
    %108 = vector.broadcast %cst_56 : f32 to vector<4x512xf32>
    %109 = arith.maximumf %107, %108 : vector<4x512xf32>
    %c17_i32_57 = arith.constant 17 : i32
    %110 = tpu.dynamic_rotate %109 by %c17_i32_57 dim 1 : vector<4x512xf32>, i32 -> vector<4x512xf32>
    %cst_58 = arith.constant 0.000000e+00 : f32
    %111 = vector.shape_cast %29 : vector<1x512xi1> to vector<1x512xi1>
    %112 = vector.broadcast %111 : vector<1x512xi1> to vector<4x512xi1>
    %113 = vector.broadcast %cst_58 : f32 to vector<4x512xf32>
    %114 = arith.select %112, %110, %113 : vector<4x512xi1>, vector<4x512xf32>
    %c0_59 = arith.constant 0 : index
    %c0_60 = arith.constant 0 : index
    %115 = vector.load %arg7[%c0_59, %c0_60] : memref<72x512xf32, #tpu.memory_space<vmem>>, vector<4x512xf32>
    tpu.vector_store %arg7[%c0_59, %c0_60], %114 {strides = array<i32>} : memref<72x512xf32, #tpu.memory_space<vmem>>, vector<4x512xf32>,
    %c16_i32_61 = arith.constant 16 : i32
    %116 = tpu.dynamic_rotate %109 by %c16_i32_61 dim 1 : vector<4x512xf32>, i32 -> vector<4x512xf32>
    %cst_62 = arith.constant 0.000000e+00 : f32
    %117 = vector.shape_cast %31 : vector<1x512xi1> to vector<1x512xi1>
    %118 = vector.broadcast %117 : vector<1x512xi1> to vector<4x512xi1>
    %119 = vector.broadcast %cst_62 : f32 to vector<4x512xf32>
    %120 = arith.select %118, %116, %119 : vector<4x512xi1>, vector<4x512xf32>
    %c8_63 = arith.constant 8 : index
    %c0_64 = arith.constant 0 : index
    %121 = vector.load %arg7[%c8_63, %c0_64] : memref<72x512xf32, #tpu.memory_space<vmem>>, vector<4x512xf32>
    tpu.vector_store %arg7[%c8_63, %c0_64], %120 {strides = array<i32>} : memref<72x512xf32, #tpu.memory_space<vmem>>, vector<4x512xf32>,
    %c15_i32_65 = arith.constant 15 : i32
    %122 = tpu.dynamic_rotate %109 by %c15_i32_65 dim 1 : vector<4x512xf32>, i32 -> vector<4x512xf32>
    %cst_66 = arith.constant 0.000000e+00 : f32
    %123 = vector.shape_cast %36 : vector<1x512xi1> to vector<1x512xi1>
    %124 = vector.broadcast %123 : vector<1x512xi1> to vector<4x512xi1>
    %125 = vector.broadcast %cst_66 : f32 to vector<4x512xf32>
    %126 = arith.select %124, %122, %125 : vector<4x512xi1>, vector<4x512xf32>
    %c16_67 = arith.constant 16 : index
    %c0_68 = arith.constant 0 : index
    %127 = vector.load %arg7[%c16_67, %c0_68] : memref<72x512xf32, #tpu.memory_space<vmem>>, vector<4x512xf32>
    tpu.vector_store %arg7[%c16_67, %c0_68], %126 {strides = array<i32>} : memref<72x512xf32, #tpu.memory_space<vmem>>, vector<4x512xf32>,
    %c1_i32_69 = arith.constant 1 : i32
    %128 = tpu.dynamic_rotate %109 by %c1_i32_69 dim 1 : vector<4x512xf32>, i32 -> vector<4x512xf32>
    %cst_70 = arith.constant 0.000000e+00 : f32
    %129 = vector.shape_cast %38 : vector<1x512xi1> to vector<1x512xi1>
    %130 = vector.broadcast %129 : vector<1x512xi1> to vector<4x512xi1>
    %131 = vector.broadcast %cst_70 : f32 to vector<4x512xf32>
    %132 = arith.select %130, %128, %131 : vector<4x512xi1>, vector<4x512xf32>
    %c24_71 = arith.constant 24 : index
    %c0_72 = arith.constant 0 : index
    %133 = vector.load %arg7[%c24_71, %c0_72] : memref<72x512xf32, #tpu.memory_space<vmem>>, vector<4x512xf32>
    tpu.vector_store %arg7[%c24_71, %c0_72], %132 {strides = array<i32>} : memref<72x512xf32, #tpu.memory_space<vmem>>, vector<4x512xf32>,
    %c32_73 = arith.constant 32 : index
    %c0_74 = arith.constant 0 : index
    %134 = vector.load %arg7[%c32_73, %c0_74] : memref<72x512xf32, #tpu.memory_space<vmem>>, vector<4x512xf32>
    tpu.vector_store %arg7[%c32_73, %c0_74], %109 {strides = array<i32>} : memref<72x512xf32, #tpu.memory_space<vmem>>, vector<4x512xf32>,
    %c511_i32_75 = arith.constant 511 : i32
    %135 = tpu.dynamic_rotate %109 by %c511_i32_75 dim 1 : vector<4x512xf32>, i32 -> vector<4x512xf32>
    %cst_76 = arith.constant 0.000000e+00 : f32
    %136 = vector.shape_cast %40 : vector<1x512xi1> to vector<1x512xi1>
    %137 = vector.broadcast %136 : vector<1x512xi1> to vector<4x512xi1>
    %138 = vector.broadcast %cst_76 : f32 to vector<4x512xf32>
    %139 = arith.select %137, %135, %138 : vector<4x512xi1>, vector<4x512xf32>
    %c40_77 = arith.constant 40 : index
    %c0_78 = arith.constant 0 : index
    %140 = vector.load %arg7[%c40_77, %c0_78] : memref<72x512xf32, #tpu.memory_space<vmem>>, vector<4x512xf32>
    tpu.vector_store %arg7[%c40_77, %c0_78], %139 {strides = array<i32>} : memref<72x512xf32, #tpu.memory_space<vmem>>, vector<4x512xf32>,
    %c497_i32_79 = arith.constant 497 : i32
    %141 = tpu.dynamic_rotate %109 by %c497_i32_79 dim 1 : vector<4x512xf32>, i32 -> vector<4x512xf32>
    %cst_80 = arith.constant 0.000000e+00 : f32
    %142 = vector.shape_cast %45 : vector<1x512xi1> to vector<1x512xi1>
    %143 = vector.broadcast %142 : vector<1x512xi1> to vector<4x512xi1>
    %144 = vector.broadcast %cst_80 : f32 to vector<4x512xf32>
    %145 = arith.select %143, %141, %144 : vector<4x512xi1>, vector<4x512xf32>
    %c48_81 = arith.constant 48 : index
    %c0_82 = arith.constant 0 : index
    %146 = vector.load %arg7[%c48_81, %c0_82] : memref<72x512xf32, #tpu.memory_space<vmem>>, vector<4x512xf32>
    tpu.vector_store %arg7[%c48_81, %c0_82], %145 {strides = array<i32>} : memref<72x512xf32, #tpu.memory_space<vmem>>, vector<4x512xf32>,
    %c496_i32_83 = arith.constant 496 : i32
    %147 = tpu.dynamic_rotate %109 by %c496_i32_83 dim 1 : vector<4x512xf32>, i32 -> vector<4x512xf32>
    %cst_84 = arith.constant 0.000000e+00 : f32
    %148 = vector.shape_cast %47 : vector<1x512xi1> to vector<1x512xi1>
    %149 = vector.broadcast %148 : vector<1x512xi1> to vector<4x512xi1>
    %150 = vector.broadcast %cst_84 : f32 to vector<4x512xf32>
    %151 = arith.select %149, %147, %150 : vector<4x512xi1>, vector<4x512xf32>
    %c56_85 = arith.constant 56 : index
    %c0_86 = arith.constant 0 : index
    %152 = vector.load %arg7[%c56_85, %c0_86] : memref<72x512xf32, #tpu.memory_space<vmem>>, vector<4x512xf32>
    tpu.vector_store %arg7[%c56_85, %c0_86], %151 {strides = array<i32>} : memref<72x512xf32, #tpu.memory_space<vmem>>, vector<4x512xf32>,
    %c495_i32_87 = arith.constant 495 : i32
    %153 = tpu.dynamic_rotate %109 by %c495_i32_87 dim 1 : vector<4x512xf32>, i32 -> vector<4x512xf32>
    %cst_88 = arith.constant 0.000000e+00 : f32
    %154 = vector.shape_cast %52 : vector<1x512xi1> to vector<1x512xi1>
    %155 = vector.broadcast %154 : vector<1x512xi1> to vector<4x512xi1>
    %156 = vector.broadcast %cst_88 : f32 to vector<4x512xf32>
    %157 = arith.select %155, %153, %156 : vector<4x512xi1>, vector<4x512xf32>
    %c64_89 = arith.constant 64 : index
    %c0_90 = arith.constant 0 : index
    %158 = vector.load %arg7[%c64_89, %c0_90] : memref<72x512xf32, #tpu.memory_space<vmem>>, vector<4x512xf32>
    tpu.vector_store %arg7[%c64_89, %c0_90], %157 {strides = array<i32>} : memref<72x512xf32, #tpu.memory_space<vmem>>, vector<4x512xf32>,
    %c0_91 = arith.constant 0 : index
    %c0_92 = arith.constant 0 : index
    %159 = vector.load %arg4[%c0_91, %c0_92] : memref<4x72xf32, #tpu.memory_space<vmem>>, vector<4x72xf32>
    %c0_93 = arith.constant 0 : index
    %c0_94 = arith.constant 0 : index
    %160 = vector.load %arg7[%c0_93, %c0_94] : memref<72x512xf32, #tpu.memory_space<vmem>>, vector<72x512xf32>
    %cst_95 = arith.constant dense<0.000000e+00> : vector<4x512xf32>
    %161 = tpu.matmul %159, %160, %cst_95 {dimension_numbers = #tpu.dot_dimension_numbers<[1], [0], [0], [1], [0, 0, 1, 1], [], []>} : vector<4x72xf32>, vector<72x512xf32>, vector<4x512xf32> -> vector<4x512xf32>
    %c0_96 = arith.constant 0 : index
    %c0_97 = arith.constant 0 : index
    %162 = vector.load %arg5[%c0_96, %c0_97] : memref<4x1xf32, #tpu.memory_space<vmem>>, vector<4x1xf32>
    %163 = vector.broadcast %162 : vector<4x1xf32> to vector<4x512xf32>
    %164 = arith.addf %161, %163 : vector<4x512xf32>
    %165 = arith.addf %164, %1 : vector<4x512xf32>
    %cst_98 = arith.constant 0.000000e+00 : f32
    %166 = vector.broadcast %cst_98 : f32 to vector<4x512xf32>
    %167 = arith.maximumf %165, %166 : vector<4x512xf32>
    %c0_99 = arith.constant 0 : index
    %c0_100 = arith.constant 0 : index
    %c0_101 = arith.constant 0 : index
    %168 = vector.load %arg6[%c0_99, %c0_100, %c0_101] : memref<1x4x512xf32, #tpu.memory_space<vmem>>, vector<1x4x512xf32>
    %169 = vector.shape_cast %168 : vector<1x4x512xf32> to vector<4x512xf32>
    %170 = vector.shape_cast %167 : vector<4x512xf32> to vector<1x4x512xf32>
    tpu.vector_store %arg6[%c0_99, %c0_100, %c0_101], %170 {strides = array<i32>} : memref<1x4x512xf32, #tpu.memory_space<vmem>>, vector<1x4x512xf32>,
    return
  }
  func.func @transform_0(%arg0: i32) -> (i32, i32, i32) {
    %c0_i32 = arith.constant 0 : i32
    %c0_i32_0 = arith.constant 0 : i32
    %c0_i32_1 = arith.constant 0 : i32
    return %arg0, %c0_i32, %c0_i32_0 : i32, i32, i32
  }
  func.func @transform_1(%arg0: i32) -> (i32, i32) {
    %c0_i32 = arith.constant 0 : i32
    %c0_i32_0 = arith.constant 0 : i32
    %c0_i32_1 = arith.constant 0 : i32
    return %c0_i32, %c0_i32_0 : i32, i32
  }
  func.func @transform_2(%arg0: i32) -> (i32, i32) {
    %c0_i32 = arith.constant 0 : i32
    %c0_i32_0 = arith.constant 0 : i32
    %c0_i32_1 = arith.constant 0 : i32
    return %c0_i32, %c0_i32_0 : i32, i32
  }
  func.func @transform_3(%arg0: i32) -> (i32, i32) {
    %c0_i32 = arith.constant 0 : i32
    %c0_i32_0 = arith.constant 0 : i32
    %c0_i32_1 = arith.constant 0 : i32
    return %c0_i32, %c0_i32_0 : i32, i32
  }
  func.func @transform_4(%arg0: i32) -> (i32, i32) {
    %c0_i32 = arith.constant 0 : i32
    %c0_i32_0 = arith.constant 0 : i32
    %c0_i32_1 = arith.constant 0 : i32
    return %c0_i32, %c0_i32_0 : i32, i32
  }
  func.func @transform_5(%arg0: i32) -> (i32, i32, i32) {
    %c0_i32 = arith.constant 0 : i32
    %c0_i32_0 = arith.constant 0 : i32
    %c0_i32_1 = arith.constant 0 : i32
    return %arg0, %c0_i32, %c0_i32_0 : i32, i32, i32
  }
}

</mosaic_0001>

<bundles_post_ra>
// kernel: tpu_custom_call.1
= control target key start
LH: loop header
LB: loop body
LE: loop exit
PB: predicated region body
PF: predicated region fallthrough
CT: control target
= control target key end

     0   :  { %10 = vsyncpa [#allocation4], 0  ;;  %s1580_s0 = inlined_call_operand.hbm [shape: f32[1,4,512], index: 0, kind: input, shape index: {}]   ;;  %s1581_s1 = inlined_call_operand.vmem [shape: f32[4,72], index: 1, kind: input, shape index: {}]   ;;  %s1582_s2 = inlined_call_operand.vmem [shape: f32[4,1], index: 2, kind: input, shape index: {}]   ;;  %s1583_s3 = inlined_call_operand.vmem [shape: f32[4,72], index: 3, kind: input, shape index: {}]   ;;  %s1584_s4 = inlined_call_operand.vmem [shape: f32[4,1], index: 4, kind: input, shape index: {}]   ;;  %s1585_s5 = inlined_call_operand.hbm [shape: f32[1,4,512], index: 5, kind: output, shape index: {}]  }
   0x1   :  { %11 = vsyncpa [#allocation5], 0  ;;  %s999_s18 = smov [#allocation3]  }
   0x2   :  { %s18_s19 = sshll.u32 %s999_s18, 4  ;;  %s19_s19 = int_to_ptr.vmem [resolvable:$true] %s18_s19 }
   0x3   :  { %s963_s20 = scalar_lea.vmem %s19_s19, 256  ;;  %p968_p1 = scmp.lt.s32.totalorder %s19_s19, %s19_s19 }
   0x4   :  { %p964_p0 = scmp.ne.s32.totalorder %s19_s19, %s963_s20  ;;  %p969_p2 = scmp.lt.s32.totalorder %s963_s20, %s963_s20 }
   0x6   :  { %p970_p3 = por %p969_p2, %p968_p1 }
   0x8   :  { %p971_p4 = pnand %p970_p3, %p964_p0 }
   0xa   :  { %974 = shalt.err (!%p971_p4)
}
   0xb   :  { %21 = dma.hbm_to_vmem [thread:$0]  %s1580_s0, 256, %s19_s19, [#allocation4]  }
   0xc   :  { %995 = dma.done.wait [#allocation4], 256  }
   0xd   :  { %996 = vsyncadd [#allocation4], 4294967040  ;;  %v1000_v0 = vmov 0.0   ;;  %v1082_v1 = vld [vmem:[#allocation3 + $0x8] sm:$0xff]  ;;  %v1084_v2 = vld [vmem:[#allocation3] sm:$0xff]  ;;  %s1001_s0 = smov 111   ;;  %v71_v7 = vlaneseq }
   0xe   :  { %70 = vst [vmem:[#allocation2 + $0xe8] sm:$0xf0] %v1000_v0  ;;  %35 = vst [vmem:[#allocation2 + $0xb0] sm:$0xf0] %v1000_v0  ;;  %469 = vmatprep.mubr.f32.mxu0 %v1000_v0  ;;  %540 = vmatprep.mubr.f32.mxu1 %v1000_v0  ;;  %v1094_v3 = vcombine.high %v1082_v1, %v1082_v1  ;;  %v1098_v4 = vcombine.high %v1084_v2, %v1084_v2  ;;  %s1002_s23 = smov 112   ;;  %s1003_s24 = smov 113  }
   0xf   :  { %36 = vst [vmem:[#allocation2 + $0xd0] sm:$0xf0] %v1000_v0  ;;  %37 = vst [vmem:[#allocation2 + $0x10] sm:$0xf0] %v1000_v0  ;;  %333 = vrot.lane.b32.xlu1 %v1082_v1, %s1001_s0  ;;  %329 = vrot.lane.b32.xlu0 %v1084_v2, %s1001_s0  ;;  %s1004_s25 = smov 127   ;;  %s1005_s26 = smov 1  }
  0x10   :  { %38 = vst [vmem:[#allocation2 + $0x48] sm:$0xf0] %v1000_v0  ;;  %39 = vst [vmem:[#allocation2 + $0x108] sm:$0xf0] %v1000_v0  ;;  %s1006_s27 = smov 15   ;;  %s1007_s28 = smov 16  }
  0x11   :  { %40 = vst [vmem:[#allocation2 + $0x68] sm:$0xf0] %v1000_v0  ;;  %41 = vst [vmem:[#allocation2 + $0x30] sm:$0xf0] %v1000_v0  ;;  %s1008_s29 = smov 17   ;;  %v1009_v5 = vmov 0  }
  0x12   :  { %42 = vst [vmem:[#allocation2 + $0x18] sm:$0xf0] %v1000_v0  ;;  %43 = vst [vmem:[#allocation2 + $0x80] sm:$0xf0] %v1000_v0  ;;  %952 = vset.pattern.permute.xlu0 %v1009_v5  ;;  %v395_v6 = vld [vmem:[%s1582_s2] sm:$0xf] }
  0x13   :  { %44 = vst [vmem:[#allocation2 + $0x110] sm:$0xf0] %v1000_v0  ;;  %45 = vst [vmem:[#allocation2 + $0x118] sm:$0xf0] %v1000_v0  ;;  %335 = vrot.lane.b32.xlu1 %v1094_v3, %s1001_s0  ;;  %300 = vrot.lane.b32.xlu0 %v1084_v2, %s1002_s23  ;;  %v1165_v8 = vand.u32 127, %v71_v7 }
  0x14   :  { %46 = vst [vmem:[#allocation2 + $0x98] sm:$0xf0] %v1000_v0  ;;  %47 = vst [vmem:[#allocation2 + $0xf8] sm:$0xf0] %v1000_v0 }
  0x15   :  { %48 = vst [vmem:[#allocation2 + $0x38] sm:$0xf0] %v1000_v0  ;;  %49 = vst [vmem:[#allocation2 + $0x8] sm:$0xf0] %v1000_v0  ;;  %v75_v9 = vadd.s32 384, %v1165_v8  ;;  %v1169_v10 = vadd.s32 256, %v1165_v8 }
  0x16   :  { %50 = vst [vmem:[#allocation2 + $0x78] sm:$0xf0] %v1000_v0  ;;  %51 = vst [vmem:[#allocation2 + $0x20] sm:$0xf0] %v1000_v0  ;;  %v73_v12 = vadd.s32 128, %v1165_v8  ;;  %v76_v17 = vand.u32 255, %v1165_v8 }
  0x17   :  { %52 = vst [vmem:[#allocation2 + $0xc8] sm:$0xf0] %v1000_v0  ;;  %53 = vst [vmem:[#allocation2 + $0x90] sm:$0xf0] %v1000_v0  ;;  %302 = vrot.lane.b32.xlu1 %v1098_v4, %s1002_s23  ;;  %331 = vrot.lane.b32.xlu0 %v1098_v4, %s1001_s0  ;;  %v79_v11 = vand.u32 255, %v75_v9  ;;  %v78_v13 = vand.u32 255, %v1169_v10 }
  0x18   :  { %54 = vst [vmem:[#allocation2 + $0xa0] sm:$0xf0] %v1000_v0  ;;  %55 = vst [vmem:[#allocation2 + $0x70] sm:$0xf0] %v1000_v0  ;;  %v77_v15 = vand.u32 255, %v73_v12  ;;  %vm1587_vm2 = vcmp.lt.s32.totalorder %v1165_v8, 111 }
  0x19   :  { %56 = vst [vmem:[#allocation2 + $0x58] sm:$0xf0] %v1000_v0  ;;  %57 = vst [vmem:[#allocation2 + $0xe0] sm:$0xf0] %v1000_v0  ;;  %v1173_v14 = vand.u32 15, %v79_v11  ;;  %v1177_v16 = vand.u32 15, %v78_v13 }
  0x1a   :  { %58 = vst [vmem:[#allocation2 + $0x60] sm:$0xf0] %v1000_v0  ;;  %59 = vst [vmem:[#allocation2 + $0xa8] sm:$0xf0] %v1000_v0  ;;  %vm1181_vm1 = vcmp.lt.s32.totalorder %v79_v11, 240  ;;  %v1185_v21 = vand.u32 15, %v77_v15 }
  0x1b   :  { %60 = vst [vmem:[#allocation2 + $0x88] sm:$0xf0] %v1000_v0  ;;  %61 = vst [vmem:[#allocation2 + $0xd8] sm:$0xf0] %v1000_v0  ;;  %306 = vrot.lane.b32.xlu1 %v1094_v3, %s1002_s23  ;;  %304 = vrot.lane.b32.xlu0 %v1082_v1, %s1002_s23  ;;  %vm1597_vm0 = vcmp.lt.s32.totalorder %v1173_v14, 15  ;;  %vm1598_vm3 = vcmp.lt.s32.totalorder %v1177_v16, 15 }
  0x1c   :  { %62 = vst [vmem:[#allocation2 + $0xc0] sm:$0xf0] %v1000_v0  ;;  %63 = vst [vmem:[#allocation2 + $0x50] sm:$0xf0] %v1000_v0  ;;  %v1199_v23 = vand.u32 15, %v76_v17  ;;  %vm1594_vm5 = vcmp.lt.s32.totalorder %v1185_v21, 15 }
  0x1d   :  { %64 = vst [vmem:[#allocation2 + $0xf0] sm:$0xf0] %v1000_v0  ;;  %65 = vst [vmem:[#allocation2 + $0xb8] sm:$0xf0] %v1000_v0  ;;  %vm1202_vm6 = vcmp.lt.s32.totalorder %v77_v15, 240  ;;  %vm1586_vm7 = vcmp.lt.s32.totalorder %v1165_v8, 112 }
  0x1e   :  { %66 = vst [vmem:[#allocation2 + $0x28] sm:$0xf0] %v1000_v0  ;;  %67 = vst [vmem:[#allocation2 + $0x100] sm:$0xf0] %v1000_v0  ;;  %vm1599_vm8 = vcmp.lt.s32.totalorder %v1199_v23, 15  ;;  %vm1588_vm10 = vcmp.lt.s32.totalorder %v1165_v8, 113 }
  0x1f   :  { %68 = vst [vmem:[#allocation2] sm:$0xf0] %v1000_v0  ;;  %69 = vst [vmem:[#allocation2 + $0x40] sm:$0xf0] %v1000_v0  ;;  %273 = vrot.lane.b32.xlu1 %v1098_v4, %s1003_s24  ;;  %271 = vrot.lane.b32.xlu0 %v1084_v2, %s1003_s24  ;;  %vm1593_vm11 = vcmp.ge.s32.totalorder %v1199_v23, 1  ;;  %vm1591_vm12 = vcmp.ge.s32.totalorder %v1173_v14, 1 }
  0x20   :  { %240 = vst [vmem:[#allocation2 + $0x90] sm:$0xf] %v1082_v1  ;;  %238 = vst [vmem:[#allocation2 + $0x20] sm:$0xf] %v1084_v2  ;;  %vm1602_vm13 = vcmp.ge.s32.totalorder %v1185_v21, 1  ;;  %vm1592_vm15 = vcmp.ge.s32.totalorder %v1177_v16, 1 }
  0x21   :  { %241 = vst [vmem:[#allocation2 + $0xa0] sm:$0xf] %v1094_v3  ;;  %239 = vst [vmem:[#allocation2 + $0xc8] sm:$0xf] %v1098_v4 }
  0x22   :  { %vm1193_vm4 = vmand %vm1181_vm1, %vm1597_vm0 }
  0x23   :  { %277 = vrot.lane.b32.xlu1 %v1094_v3, %s1003_s24  ;;  %275 = vrot.lane.b32.xlu0 %v1082_v1, %s1003_s24  ;;  %vm1220_vm9 = vmand %vm1202_vm6, %vm1594_vm5 }
  0x24   :  { %vm1256_vm14 = vmand %vm1181_vm1, %vm1591_vm12 }
  0x27   :  { %244 = vrot.lane.b32.xlu1 %v1098_v4, %s1004_s25  ;;  %242 = vrot.lane.b32.xlu0 %v1084_v2, %s1004_s25 }
  0x2b   :  { %248 = vrot.lane.b32.xlu1 %v1094_v3, %s1004_s25  ;;  %246 = vrot.lane.b32.xlu0 %v1082_v1, %s1004_s25 }
  0x2f   :  { %211 = vrot.lane.b32.xlu1 %v1098_v4, %s1005_s26  ;;  %209 = vrot.lane.b32.xlu0 %v1084_v2, %s1005_s26 }
  0x33   :  { %215 = vrot.lane.b32.xlu1 %v1094_v3, %s1005_s26  ;;  %213 = vrot.lane.b32.xlu0 %v1082_v1, %s1005_s26 }
  0x37   :  { %182 = vrot.lane.b32.xlu1 %v1098_v4, %s1006_s27  ;;  %180 = vrot.lane.b32.xlu0 %v1084_v2, %s1006_s27 }
  0x3b   :  { %186 = vrot.lane.b32.xlu1 %v1094_v3, %s1006_s27  ;;  %184 = vrot.lane.b32.xlu0 %v1082_v1, %s1006_s27 }
  0x3f   :  { %153 = vrot.lane.b32.xlu1 %v1098_v4, %s1007_s28  ;;  %151 = vrot.lane.b32.xlu0 %v1084_v2, %s1007_s28 }
  0x43   :  { %157 = vrot.lane.b32.xlu1 %v1094_v3, %s1007_s28  ;;  %155 = vrot.lane.b32.xlu0 %v1082_v1, %s1007_s28 }
  0x47   :  { %124 = vrot.lane.b32.xlu1 %v1098_v4, %s1008_s29  ;;  %122 = vrot.lane.b32.xlu0 %v1084_v2, %s1008_s29 }
  0x4b   :  { %128 = vrot.lane.b32.xlu1 %v1094_v3, %s1008_s29  ;;  %126 = vrot.lane.b32.xlu0 %v1082_v1, %s1008_s29 }
  0x4f   :  { %398 = vperm.xlu0 %952, %v395_v6  }
  0x81   :  { %v334_v18 = vpop.permute.xlu1 %333  ;;  %v330_v19 = vpop.permute.xlu0 %329 }
  0x85   :  { %v336_v24 = vpop.permute.xlu1 %335  ;;  %v301_v25 = vpop.permute.xlu0 %300 }
  0x86   :  { %v338_v27 = vsel %vm1587_vm2, %v334_v18, %v336_v24  ;;  %v341_v28 = vsel %vm1587_vm2, %v336_v24, %v330_v19 }
  0x87   :  { %v352_v29 = vsel %vm1598_vm3, %v338_v27, 0.0  ;;  %v353_v30 = vsel %vm1193_vm4, %v341_v28, 0.0 }
  0x88   :  { %356 = vst [vmem:[#allocation2 + $0x40] sm:$0xf] %v352_v29  ;;  %357 = vst [vmem:[#allocation2 + $0xe8] sm:$0xf] %v353_v30 }
  0x89   :  { %v303_v32 = vpop.permute.xlu1 %302  ;;  %v332_v33 = vpop.permute.xlu0 %331 }
  0x8a   :  { %v311_v34 = vsel %vm1586_vm7, %v301_v25, %v303_v32  ;;  %v339_v35 = vsel %vm1587_vm2, %v332_v33, %v334_v18  ;;  %v340_v36 = vsel %vm1587_vm2, %v330_v19, %v332_v33  ;;  %vm1589_vm2 = vcmp.lt.s32.totalorder %v1165_v8, 127 }
  0x8b   :  { %325 = vst [vmem:[#allocation2 + $0x50] sm:$0xf] %v311_v34  ;;  %v350_v37 = vsel %vm1599_vm8, %v340_v36, 0.0  ;;  %v351_v38 = vsel %vm1220_vm9, %v339_v35, 0.0 }
  0x8c   :  { %354 = vst [vmem:[#allocation2 + $0x100] sm:$0xf] %v350_v37  ;;  %355 = vst [vmem:[#allocation2] sm:$0xf] %v351_v38 }
  0x8d   :  { %v307_v39 = vpop.permute.xlu1 %306  ;;  %v305_v40 = vpop.permute.xlu0 %304 }
  0x8e   :  { %v312_v41 = vsel %vm1586_vm7, %v307_v39, %v301_v25  ;;  %v309_v42 = vsel %vm1586_vm7, %v305_v40, %v307_v39  ;;  %v310_v43 = vsel %vm1586_vm7, %v303_v32, %v305_v40  ;;  %vm1265_vm7 = vmand %vm1202_vm6, %vm1602_vm13 }
  0x8f   :  { %v324_v44 = vsel %vm1181_vm1, %v312_v41, 0.0  ;;  %v322_v45 = vsel %vm1202_vm6, %v310_v43, 0.0  ;;  %327 = vst [vmem:[#allocation2 + $0xb8] sm:$0xf] %v309_v42  ;;  %v394_v46 = vld [vmem:[#allocation2 + $0xe8] sm:$0xff]  ;;  %v393_v47 = vld [vmem:[#allocation2 + $0x40] sm:$0xff] }
  0x90   :  { %328 = vst [vmem:[#allocation2 + $0x28] sm:$0xf] %v324_v44  ;;  %326 = vst [vmem:[#allocation2 + $0xf0] sm:$0xf] %v322_v45  ;;  %490 = vmatprep.subr.mxu1 %v394_v46  ;;  %v376_v46 = vld [vmem:[#allocation2 + $0xc8] sm:$0xff] }
  0x91   :  { %491 = vmatpush1.msra.mxu1 %v393_v47  ;;  %v274_v48 = vpop.permute.xlu1 %273  ;;  %v272_v49 = vpop.permute.xlu0 %271  ;;  %v378_v47 = vld [vmem:[#allocation2 + $0xa0] sm:$0xff] }
  0x92   :  { %v282_v50 = vsel %vm1588_vm10, %v272_v49, %v274_v48  ;;  %v387_v7 = vld [vmem:[#allocation2 + $0x50] sm:$0xff] }
  0x93   :  { %v292_v51 = vsel %vm1593_vm11, %v282_v50, 0.0  ;;  %v392_v52 = vld [vmem:[#allocation2] sm:$0xff] }
  0x94   :  { %v391_v54 = vld [vmem:[#allocation2 + $0x100] sm:$0xff]  ;;  %296 = vst [vmem:[#allocation2 + $0xa8] sm:$0xf] %v292_v51  ;;  %419 = vmatprep.subr.mxu0 %v392_v52 }
  0x95   :  { %v278_v56 = vpop.permute.xlu1 %277  ;;  %420 = vmatpush1.msra.mxu0 %v391_v54  ;;  %v276_v57 = vpop.permute.xlu0 %275 }
  0x96   :  { %v283_v58 = vsel %vm1588_vm10, %v278_v56, %v272_v49  ;;  %v280_v59 = vsel %vm1588_vm10, %v276_v57, %v278_v56  ;;  %v281_v60 = vsel %vm1588_vm10, %v274_v48, %v276_v57  ;;  %v389_v9 = vld [vmem:[#allocation2 + $0xb8] sm:$0xff]  ;;  %vm1590_vm10 = vcmp.lt.s32.totalorder %v1165_v8, 1  ;;  %v375_v57 = vld [vmem:[#allocation2 + $0x20] sm:$0xff] }
  0x97   :  { %v295_v61 = vsel %vm1256_vm14, %v283_v58, 0.0  ;;  %v293_v62 = vsel %vm1265_vm7, %v281_v60, 0.0  ;;  %v294_v63 = vsel %vm1592_vm15, %v280_v59, 0.0  ;;  %v388_v5 = vld [vmem:[#allocation2 + $0xf0] sm:$0xff]  ;;  %v390_v6 = vld [vmem:[#allocation2 + $0x28] sm:$0xff] }
  0x98   :  { %299 = vst [vmem:[#allocation2 + $0xc0] sm:$0xf] %v295_v61  ;;  %297 = vst [vmem:[#allocation2 + $0x88] sm:$0xf] %v293_v62  ;;  %421 = vmatprep.subr.mxu0 %v388_v5  ;;  %492 = vmatprep.subr.mxu1 %v390_v6  ;;  %v377_v59 = vld [vmem:[#allocation2 + $0x90] sm:$0xff] }
  0x99   :  { %298 = vst [vmem:[#allocation2 + $0xd8] sm:$0xf] %v294_v63  ;;  %v245_v11 = vpop.permute.xlu1 %244  ;;  %422 = vmatpush1.msra.mxu0 %v387_v7  ;;  %493 = vmatpush1.msra.mxu1 %v389_v9  ;;  %v243_v12 = vpop.permute.xlu0 %242 }
  0x9a   :  { %v253_v15 = vsel %vm1589_vm2, %v243_v12, %v245_v11 }
  0x9b   :  { %v263_v18 = vsel %vm1599_vm8, %v253_v15, 0.0  ;;  %v383_v36 = vld [vmem:[#allocation2 + $0xa8] sm:$0xff] }
  0x9c   :  { %267 = vst [vmem:[#allocation2 + $0x70] sm:$0xf] %v263_v18 }
  0x9d   :  { %v249_v19 = vpop.permute.xlu1 %248  ;;  %v247_v24 = vpop.permute.xlu0 %246 }
  0x9e   :  { %v254_v25 = vsel %vm1589_vm2, %v249_v19, %v243_v12  ;;  %v251_v27 = vsel %vm1589_vm2, %v247_v24, %v249_v19  ;;  %v252_v28 = vsel %vm1589_vm2, %v245_v11, %v247_v24  ;;  %vm1595_vm2 = vcmp.lt.s32.totalorder %v1165_v8, 15 }
  0x9f   :  { %v266_v29 = vsel %vm1597_vm0, %v254_v25, 0.0  ;;  %v264_v30 = vsel %vm1594_vm5, %v252_v28, 0.0  ;;  %v265_v32 = vsel %vm1598_vm3, %v251_v27, 0.0  ;;  %v384_v33 = vld [vmem:[#allocation2 + $0x88] sm:$0xff]  ;;  %v386_v34 = vld [vmem:[#allocation2 + $0xc0] sm:$0xff] }
  0xa0   :  { %v385_v35 = vld [vmem:[#allocation2 + $0xd8] sm:$0xff]  ;;  %270 = vst [vmem:[#allocation2 + $0x60] sm:$0xf] %v266_v29  ;;  %268 = vst [vmem:[#allocation2 + $0x58] sm:$0xf] %v264_v30  ;;  %423 = vmatprep.subr.mxu0 %v384_v33  ;;  %494 = vmatprep.subr.mxu1 %v386_v34 }
  0xa1   :  { %269 = vst [vmem:[#allocation2 + $0xe0] sm:$0xf] %v265_v32  ;;  %v212_v37 = vpop.permute.xlu1 %211  ;;  %424 = vmatpush1.msra.mxu0 %v383_v36  ;;  %495 = vmatpush1.msra.mxu1 %v385_v35  ;;  %v210_v38 = vpop.permute.xlu0 %209 }
  0xa2   :  { %v220_v39 = vsel %vm1590_vm10, %v210_v38, %v212_v37 }
  0xa3   :  { %v231_v40 = vsel %vm1602_vm13, %v220_v39, 0.0  ;;  %v379_v56 = vld [vmem:[#allocation2 + $0x70] sm:$0xff] }
  0xa4   :  { %235 = vst [vmem:[#allocation2 + $0x38] sm:$0xf] %v231_v40 }
  0xa5   :  { %v216_v41 = vpop.permute.xlu1 %215  ;;  %v214_v42 = vpop.permute.xlu0 %213 }
  0xa6   :  { %v221_v43 = vsel %vm1590_vm10, %v216_v41, %v210_v38  ;;  %v218_v44 = vsel %vm1590_vm10, %v214_v42, %v216_v41  ;;  %v219_v45 = vsel %vm1590_vm10, %v212_v37, %v214_v42  ;;  %vm1318_vm10 = vcmp.ge.s32.totalorder %v76_v17, 16 }
  0xa7   :  { %v230_v48 = vsel %vm1593_vm11, %v221_v43, 0.0  ;;  %v232_v49 = vsel %vm1592_vm15, %v219_v45, 0.0  ;;  %v233_v50 = vsel %vm1591_vm12, %v218_v44, 0.0  ;;  %v380_v51 = vld [vmem:[#allocation2 + $0x58] sm:$0xff]  ;;  %v382_v52 = vld [vmem:[#allocation2 + $0x60] sm:$0xff]  ;;  %vm1324_vm12 = vcmp.ge.s32.totalorder %v78_v13, 16  ;;  %vm1336_vm15 = vmand %vm1318_vm10, %vm1599_vm8 }
  0xa8   :  { %v381_v54 = vld [vmem:[#allocation2 + $0xe0] sm:$0xff]  ;;  %234 = vst [vmem:[#allocation2 + $0xf8] sm:$0xf] %v230_v48  ;;  %236 = vst [vmem:[#allocation2 + $0x8] sm:$0xf] %v232_v49  ;;  %425 = vmatprep.subr.mxu0 %v380_v51  ;;  %496 = vmatprep.subr.mxu1 %v382_v52  ;;  %v1625_v48 = vmov 0 }
  0xa9   :  { %237 = vst [vmem:[#allocation2 + $0x78] sm:$0xf] %v233_v50  ;;  %v183_v60 = vpop.permute.xlu1 %182  ;;  %426 = vmatpush1.msra.mxu0 %v379_v56  ;;  %497 = vmatpush1.msra.mxu1 %v381_v54  ;;  %v181_v61 = vpop.permute.xlu0 %180  ;;  %vm1344_vm11 = vmand %vm1324_vm12, %vm1598_vm3  ;;  %vm1627_vm3 = vcmp.ge.s32.totalorder %v1177_v16, 1 }
  0xaa   :  { %v191_v63 = vsel %vm1595_vm2, %v181_v61, %v183_v60  ;;  %427 = vmatprep.subr.mxu0 %v376_v46  ;;  %498 = vmatprep.subr.mxu1 %v378_v47  ;;  %vm1390_vm8 = vmand %vm1324_vm12, %vm1627_vm3  ;;  %vm1630_vm3 = vcmp.ge.s32.totalorder %v1173_v14, 1 }
  0xab   :  { %v202_v17 = vsel %vm1594_vm5, %v191_v63, 0.0  ;;  %428 = vmatpush1.msra.mxu0 %v375_v57  ;;  %v372_v5 = vld [vmem:[#allocation2 + $0x38] sm:$0xff]  ;;  %499 = vmatpush1.msra.mxu1 %v377_v59  ;;  %vm1596_vm5 = vcmp.lt.s32.totalorder %v1165_v8, 16 }
  0xac   :  { %206 = vst [vmem:[#allocation2 + $0x110] sm:$0xf] %v202_v17  ;;  %429 = vmatprep.subr.mxu0 %v372_v5 }
  0xad   :  { %v187_v6 = vpop.permute.xlu1 %186  ;;  %v185_v7 = vpop.permute.xlu0 %184 }
  0xae   :  { %v192_v9 = vsel %vm1595_vm2, %v187_v6, %v181_v61  ;;  %v189_v11 = vsel %vm1595_vm2, %v185_v7, %v187_v6  ;;  %v190_v12 = vsel %vm1595_vm2, %v183_v60, %v185_v7  ;;  %vm1601_vm2 = vcmp.lt.s32.totalorder %v1165_v8, 17  ;;  %v358_v6 = vld [vmem:[%s1581_s1] sm:$0xf] }
  0xaf   :  { %v201_v15 = vsel %vm1336_vm15, %v192_v9, 0.0  ;;  %v203_v18 = vsel %vm1344_vm11, %v190_v12, 0.0  ;;  %v204_v19 = vsel %vm1597_vm0, %v189_v11, 0.0  ;;  %v371_v24 = vld [vmem:[#allocation2 + $0xf8] sm:$0xff]  ;;  %v373_v27 = vld [vmem:[#allocation2 + $0x8] sm:$0xff] }
  0xb0   :  { %v374_v25 = vld [vmem:[#allocation2 + $0x78] sm:$0xff]  ;;  %205 = vst [vmem:[#allocation2 + $0x80] sm:$0xf] %v201_v15  ;;  %207 = vst [vmem:[#allocation2 + $0x118] sm:$0xf] %v203_v18  ;;  %430 = vmatpush1.msra.mxu0 %v371_v24 }
  0xb1   :  { %208 = vst [vmem:[#allocation2 + $0x98] sm:$0xf] %v204_v19  ;;  %500 = vmatprep.subr.mxu1 %v374_v25  ;;  %v154_v28 = vpop.permute.xlu1 %153  ;;  %v152_v29 = vpop.permute.xlu0 %151 }
  0xb2   :  { %501 = vmatpush1.msra.mxu1 %v373_v27  ;;  %v162_v30 = vsel %vm1596_vm5, %v152_v29, %v154_v28 }
  0xb3   :  { %177 = vst [vmem:[#allocation2 + $0x68] sm:$0xf] %v162_v30  ;;  %v368_v32 = vld [vmem:[#allocation2 + $0x110] sm:$0xff] }
  0xb4   :  { %431 = vmatprep.subr.mxu0 %v368_v32 }
  0xb5   :  { %v158_v33 = vpop.permute.xlu1 %157  ;;  %v156_v34 = vpop.permute.xlu0 %155 }
  0xb6   :  { %v163_v35 = vsel %vm1596_vm5, %v158_v33, %v152_v29  ;;  %v160_v36 = vsel %vm1596_vm5, %v156_v34, %v158_v33  ;;  %v161_v37 = vsel %vm1596_vm5, %v154_v28, %v156_v34  ;;  %vm1624_vm5 = vcmp.ge.s32.totalorder %v1199_v23, 1 }
  0xb7   :  { %v172_v38 = vsel %vm1318_vm10, %v163_v35, 0.0  ;;  %v174_v39 = vsel %vm1324_vm12, %v161_v37, 0.0  ;;  %179 = vst [vmem:[#allocation2 + $0x18] sm:$0xf] %v160_v36  ;;  %v367_v40 = vld [vmem:[#allocation2 + $0x80] sm:$0xff]  ;;  %v369_v42 = vld [vmem:[#allocation2 + $0x118] sm:$0xff]  ;;  %vm1382_vm0 = vmand %vm1318_vm10, %vm1624_vm5 }
  0xb8   :  { %v370_v41 = vld [vmem:[#allocation2 + $0x98] sm:$0xff]  ;;  %176 = vst [vmem:[#allocation2 + $0x108] sm:$0xf] %v172_v38  ;;  %178 = vst [vmem:[#allocation2 + $0x30] sm:$0xf] %v174_v39  ;;  %432 = vmatpush1.msra.mxu0 %v367_v40  ;;  %v1626_v48 = vsel %vm1382_vm0, 4294967295, %v1625_v48 }
  0xb9   :  { %502 = vmatprep.subr.mxu1 %v370_v41  ;;  %v125_v43 = vpop.permute.xlu1 %124  ;;  %v123_v44 = vpop.permute.xlu0 %122  ;;  %vm1600_vm5 = vcmask 588800  }
  0xba   :  { %503 = vmatpush1.msra.mxu1 %v369_v42  ;;  %v133_v45 = vsel %vm1601_vm2, %v123_v44, %v125_v43  ;;  %v364_v46 = vld [vmem:[#allocation2 + $0x68] sm:$0xff] }
  0xbb   :  { %v144_v47 = vsel %vm1602_vm13, %v133_v45, 0.0  ;;  %433 = vmatprep.subr.mxu0 %v364_v46 }
  0xbc   :  { %148 = vst [vmem:[#allocation2 + $0xd0] sm:$0xf] %v144_v47 }
  0xbd   :  { %v129_v50 = vpop.permute.xlu1 %128  ;;  %v127_v51 = vpop.permute.xlu0 %126 }
  0xbe   :  { %v134_v52 = vsel %vm1601_vm2, %v129_v50, %v123_v44  ;;  %v131_v54 = vsel %vm1601_vm2, %v127_v51, %v129_v50  ;;  %v132_v56 = vsel %vm1601_vm2, %v125_v43, %v127_v51  ;;  %v366_v57 = vld [vmem:[#allocation2 + $0x18] sm:$0xff]  ;;  %vm1633_vm2 = vcmp.lt.s32.totalorder %v1199_v23, 15 }
  0xbf   :  { %v143_v59 = vsel %vm1382_vm0, %v134_v52, 0.0  ;;  %v145_v60 = vsel %vm1390_vm8, %v132_v56, 0.0  ;;  %v146_v61 = vsel %vm1630_vm3, %v131_v54, 0.0  ;;  %504 = vmatprep.subr.mxu1 %v366_v57  ;;  %v363_v63 = vld [vmem:[#allocation2 + $0x108] sm:$0xff]  ;;  %v365_v17 = vld [vmem:[#allocation2 + $0x30] sm:$0xff]  ;;  %vm1631_vm3 = vcmp.lt.s32.totalorder %v1165_v8, 111 }
  0xc0   :  { %147 = vst [vmem:[#allocation2 + $0xb0] sm:$0xf] %v143_v59  ;;  %149 = vst [vmem:[#allocation2 + $0x10] sm:$0xf] %v145_v60  ;;  %434 = vmatpush1.msra.mxu0 %v363_v63  ;;  %505 = vmatpush1.msra.mxu1 %v365_v17 }
  0xc1   :  { %150 = vst [vmem:[#allocation2 + $0x48] sm:$0xf] %v146_v61  ;;  %vm1634_vm13 = vmmov %vm1631_vm3 }
  0xc2   :  { %vm1635_vm0 = vmmov %vm1631_vm3 }
  0xc3   :  { %v360_v5 = vld [vmem:[#allocation2 + $0xd0] sm:$0xff] }
  0xc4   :  { %435 = vmatprep.subr.mxu0 %v360_v5 }
  0xc7   :  { %v359_v7 = vld [vmem:[#allocation2 + $0xb0] sm:$0xff] }
  0xc8   :  { %v362_v9 = vld [vmem:[#allocation2 + $0x48] sm:$0xff]  ;;  %v361_v11 = vld [vmem:[#allocation2 + $0x10] sm:$0xff]  ;;  %436 = vmatpush1.msra.mxu0 %v359_v7 }
  0xc9   :  { %506 = vmatprep.subr.mxu1 %v362_v9  ;;  %936 = vmatmul.mubr.msk.f32.vlgmr.msra.gmra.mxu0 %vm1600_vm5, %v358_v6 }
  0xca   :  { %507 = vmatpush1.msra.mxu1 %v361_v11  ;;  %825 = vmatprep.mubr.f32.mxu0 %v1000_v0  ;;  %v399_v12 = vpop.permute.xlu0 %398 }
  0xcb   :  { %937 = vmatmul.mubr.msk.f32.vlgmr.msra.gmra.mxu1 %vm1600_vm5, %v358_v6  ;;  %vm1632_vm5 = vmmov %vm1631_vm3 }
  0xcc   :  { %896 = vmatprep.mubr.f32.mxu1 %v1000_v0  ;;  %v752_v0 = vld [vmem:[%s1584_s4] sm:$0xf] }
 0x189   :  { %v471_v15 = vpop.f32.mrf.mxu0 }
 0x18a   :  { %v472_v18 = vadd.f32 %v471_v15, %v399_v12 }
 0x18b   :  { %v542_v19 = vpop.f32.mrf.mxu1  ;;  %v473_v25 = vpop.f32.mrf.mxu0 }
 0x18c   :  { %v543_v24 = vadd.f32 %v542_v19, %v399_v12  ;;  %v547_v27 = vmax.f32 %v472_v18, 0.0  ;;  %v474_v28 = vadd.f32 %v473_v25, %v399_v12 }
 0x18d   :  { %v544_v29 = vpop.f32.mrf.mxu1 }
 0x18e   :  { %v549_v30 = vmax.f32 %v543_v24, 0.0  ;;  %v545_v32 = vadd.f32 %v544_v29, %v399_v12  ;;  %631 = vst [vmem:[#allocation2 + $0x20] sm:$0xf] %v547_v27  ;;  %v548_v33 = vmax.f32 %v474_v28, 0.0  ;;  %695 = vrot.lane.b32.xlu1 %v547_v27, %s1001_s0 }
 0x190   :  { %633 = vst [vmem:[#allocation2 + $0x90] sm:$0xf] %v549_v30  ;;  %v550_v34 = vmax.f32 %v545_v32, 0.0  ;;  %699 = vrot.lane.b32.xlu0 %v549_v30, %s1001_s0  ;;  %632 = vst [vmem:[#allocation2 + $0xc8] sm:$0xf] %v548_v33 }
 0x192   :  { %634 = vst [vmem:[#allocation2 + $0xa0] sm:$0xf] %v550_v34  ;;  %697 = vrot.lane.b32.xlu1 %v548_v33, %s1001_s0 }
 0x194   :  { %675 = vrot.lane.b32.xlu0 %v547_v27, %s1002_s23 }
 0x196   :  { %701 = vrot.lane.b32.xlu1 %v550_v34, %s1001_s0 }
 0x198   :  { %679 = vrot.lane.b32.xlu0 %v549_v30, %s1002_s23 }
 0x19a   :  { %677 = vrot.lane.b32.xlu1 %v548_v33, %s1002_s23 }
 0x19c   :  { %655 = vrot.lane.b32.xlu0 %v547_v27, %s1003_s24 }
 0x19e   :  { %681 = vrot.lane.b32.xlu1 %v550_v34, %s1002_s23 }
 0x1a0   :  { %659 = vrot.lane.b32.xlu0 %v549_v30, %s1003_s24 }
 0x1a2   :  { %657 = vrot.lane.b32.xlu1 %v548_v33, %s1003_s24 }
 0x1a4   :  { %635 = vrot.lane.b32.xlu0 %v547_v27, %s1004_s25 }
 0x1a6   :  { %661 = vrot.lane.b32.xlu1 %v550_v34, %s1003_s24 }
 0x1a8   :  { %639 = vrot.lane.b32.xlu0 %v549_v30, %s1004_s25 }
 0x1aa   :  { %637 = vrot.lane.b32.xlu1 %v548_v33, %s1004_s25 }
 0x1ac   :  { %611 = vrot.lane.b32.xlu0 %v547_v27, %s1005_s26 }
 0x1ae   :  { %641 = vrot.lane.b32.xlu1 %v550_v34, %s1004_s25 }
 0x1b0   :  { %615 = vrot.lane.b32.xlu0 %v549_v30, %s1005_s26 }
 0x1b2   :  { %613 = vrot.lane.b32.xlu1 %v548_v33, %s1005_s26 }
 0x1b4   :  { %591 = vrot.lane.b32.xlu0 %v547_v27, %s1006_s27 }
 0x1b6   :  { %617 = vrot.lane.b32.xlu1 %v550_v34, %s1005_s26 }
 0x1b8   :  { %595 = vrot.lane.b32.xlu0 %v549_v30, %s1006_s27 }
 0x1ba   :  { %593 = vrot.lane.b32.xlu1 %v548_v33, %s1006_s27 }
 0x1bc   :  { %571 = vrot.lane.b32.xlu0 %v547_v27, %s1007_s28 }
 0x1be   :  { %597 = vrot.lane.b32.xlu1 %v550_v34, %s1006_s27 }
 0x1c0   :  { %575 = vrot.lane.b32.xlu0 %v549_v30, %s1007_s28 }
 0x1c2   :  { %573 = vrot.lane.b32.xlu1 %v548_v33, %s1007_s28 }
 0x1c4   :  { %551 = vrot.lane.b32.xlu0 %v547_v27, %s1008_s29 }
 0x1c6   :  { %577 = vrot.lane.b32.xlu1 %v550_v34, %s1007_s28 }
 0x1c8   :  { %555 = vrot.lane.b32.xlu0 %v549_v30, %s1008_s29 }
 0x1ca   :  { %553 = vrot.lane.b32.xlu1 %v548_v33, %s1008_s29 }
 0x1cc   :  { %755 = vperm.xlu0 %952, %v752_v0  }
 0x1ce   :  { %557 = vrot.lane.b32.xlu1 %v550_v34, %s1008_s29 }
 0x200   :  { %v696_v35 = vpop.permute.xlu1 %695 }
 0x202   :  { %v700_v36 = vpop.permute.xlu0 %699 }
 0x204   :  { %v698_v37 = vpop.permute.xlu1 %697 }
 0x205   :  { %v704_v38 = vsel %vm1631_vm3, %v698_v37, %v700_v36  ;;  %v705_v39 = vsel %vm1632_vm5, %v696_v35, %v698_v37  ;;  %vm1636_vm3 = vcmp.lt.s32.totalorder %v1177_v16, 15  ;;  %vm1643_vm5 = vcmp.ge.s32.totalorder %v1199_v23, 1 }
 0x206   :  { %v676_v40 = vpop.permute.xlu0 %675  ;;  %v707_v41 = vsel %vm1633_vm2, %v705_v39, 0.0  ;;  %v708_v42 = vsel %vm1220_vm9, %v704_v38, 0.0  ;;  %vm1637_vm2 = vcmp.lt.s32.totalorder %v1165_v8, 112 }
 0x207   :  { %711 = vst [vmem:[#allocation2 + $0x100] sm:$0xf] %v707_v41  ;;  %712 = vst [vmem:[#allocation2] sm:$0xf] %v708_v42 }
 0x208   :  { %v702_v43 = vpop.permute.xlu1 %701  ;;  %vm1638_vm9 = vmmov %vm1637_vm2 }
 0x209   :  { %v703_v44 = vsel %vm1634_vm13, %v700_v36, %v702_v43  ;;  %v706_v45 = vsel %vm1635_vm0, %v702_v43, %v696_v35  ;;  %vm1639_vm0 = vmmov %vm1637_vm2 }
 0x20a   :  { %v680_v46 = vpop.permute.xlu0 %679  ;;  %v709_v47 = vsel %vm1636_vm3, %v703_v44, 0.0  ;;  %v710_v50 = vsel %vm1193_vm4, %v706_v45, 0.0  ;;  %vm1640_vm4 = vmmov %vm1639_vm0 }
 0x20b   :  { %713 = vst [vmem:[#allocation2 + $0x40] sm:$0xf] %v709_v47  ;;  %714 = vst [vmem:[#allocation2 + $0xe8] sm:$0xf] %v710_v50 }
 0x20c   :  { %v678_v31 = vpop.permute.xlu1 %677 }
 0x20d   :  { %v684_v51 = vsel %vm1637_vm2, %v678_v31, %v680_v46  ;;  %v685_v52 = vsel %vm1638_vm9, %v676_v40, %v678_v31  ;;  %vm1646_vm2 = vcmp.ge.s32.totalorder %v1177_v16, 1 }
 0x20e   :  { %v656_v54 = vpop.permute.xlu0 %655  ;;  %v688_v56 = vsel %vm1202_vm6, %v684_v51, 0.0  ;;  %691 = vst [vmem:[#allocation2 + $0x50] sm:$0xf] %v685_v52  ;;  %v749_v57 = vld [vmem:[#allocation2] sm:$0xff]  ;;  %vm1641_vm6 = vcmp.lt.s32.totalorder %v1165_v8, 113 }
 0x20f   :  { %v748_v59 = vld [vmem:[#allocation2 + $0x100] sm:$0xff]  ;;  %692 = vst [vmem:[#allocation2 + $0xf0] sm:$0xf] %v688_v56  ;;  %775 = vmatprep.subr.mxu0 %v749_v57  ;;  %vm1642_vm13 = vmmov %vm1641_vm6 }
 0x210   :  { %776 = vmatpush1.msra.mxu0 %v748_v59  ;;  %v682_v22 = vpop.permute.xlu1 %681  ;;  %v733_v59 = vld [vmem:[#allocation2 + $0xc8] sm:$0xff] }
 0x211   :  { %v683_v60 = vsel %vm1639_vm0, %v680_v46, %v682_v22  ;;  %v686_v61 = vsel %vm1640_vm4, %v682_v22, %v676_v40  ;;  %vm1649_vm0 = vcmp.lt.s32.totalorder %v1199_v23, 15  ;;  %vm1650_vm4 = vcmp.lt.s32.totalorder %v1185_v21, 15 }
 0x212   :  { %v660_v63 = vpop.permute.xlu0 %659  ;;  %v690_v17 = vsel %vm1181_vm1, %v686_v61, 0.0  ;;  %693 = vst [vmem:[#allocation2 + $0xb8] sm:$0xf] %v683_v60  ;;  %v751_v26 = vld [vmem:[#allocation2 + $0xe8] sm:$0xff]  ;;  %v750_v5 = vld [vmem:[#allocation2 + $0x40] sm:$0xff]  ;;  %vm1644_vm1 = vmmov %vm1641_vm6 }
 0x213   :  { %694 = vst [vmem:[#allocation2 + $0x28] sm:$0xf] %v690_v17  ;;  %846 = vmatprep.subr.mxu1 %v751_v26  ;;  %vm1645_vm3 = vmmov %vm1644_vm1 }
 0x214   :  { %847 = vmatpush1.msra.mxu1 %v750_v5  ;;  %v658_v6 = vpop.permute.xlu1 %657 }
 0x215   :  { %v664_v7 = vsel %vm1641_vm6, %v658_v6, %v660_v63  ;;  %v665_v9 = vsel %vm1642_vm13, %v656_v54, %v658_v6  ;;  %v744_v18 = vld [vmem:[#allocation2 + $0x50] sm:$0xff]  ;;  %vm1653_vm13 = vcmp.lt.s32.totalorder %v1177_v16, 15 }
 0x216   :  { %v636_v11 = vpop.permute.xlu0 %635  ;;  %v667_v12 = vsel %vm1643_vm5, %v665_v9, 0.0  ;;  %v668_v20 = vsel %vm1265_vm7, %v664_v7, 0.0  ;;  %v745_v15 = vld [vmem:[#allocation2 + $0xf0] sm:$0xff]  ;;  %vm1647_vm7 = vcmp.lt.s32.totalorder %v1165_v8, 127  ;;  %vm1654_vm5 = vcmp.lt.s32.totalorder %v1173_v14, 15  ;;  %v735_v7 = vld [vmem:[#allocation2 + $0xa0] sm:$0xff] }
 0x217   :  { %671 = vst [vmem:[#allocation2 + $0xa8] sm:$0xf] %v667_v12  ;;  %672 = vst [vmem:[#allocation2 + $0x88] sm:$0xf] %v668_v20  ;;  %777 = vmatprep.subr.mxu0 %v745_v15  ;;  %v734_v12 = vld [vmem:[#allocation2 + $0x90] sm:$0xff] }
 0x218   :  { %778 = vmatpush1.msra.mxu0 %v744_v18  ;;  %v662_v19 = vpop.permute.xlu1 %661  ;;  %vm1648_vm9 = vmmov %vm1647_vm7 }
 0x219   :  { %v663_v24 = vsel %vm1644_vm1, %v660_v63, %v662_v19  ;;  %v666_v25 = vsel %vm1645_vm3, %v662_v19, %v656_v54  ;;  %v746_v30 = vld [vmem:[#allocation2 + $0xb8] sm:$0xff]  ;;  %vm1652_vm6 = vmmov %vm1647_vm7  ;;  %vm1655_vm1 = vcmp.lt.s32.totalorder %v1165_v8, 1  ;;  %v732_v63 = vld [vmem:[#allocation2 + $0x20] sm:$0xff] }
 0x21a   :  { %v640_v27 = vpop.permute.xlu0 %639  ;;  %v669_v28 = vsel %vm1646_vm2, %v663_v24, 0.0  ;;  %v670_v55 = vsel %vm1256_vm14, %v666_v25, 0.0  ;;  %v747_v29 = vld [vmem:[#allocation2 + $0x28] sm:$0xff]  ;;  %vm1651_vm14 = vmmov %vm1647_vm7  ;;  %vm1657_vm2 = vcmp.ge.s32.totalorder %v1185_v21, 1 }
 0x21b   :  { %673 = vst [vmem:[#allocation2 + $0xd8] sm:$0xf] %v669_v28  ;;  %674 = vst [vmem:[#allocation2 + $0xc0] sm:$0xf] %v670_v55  ;;  %848 = vmatprep.subr.mxu1 %v747_v29 }
 0x21c   :  { %849 = vmatpush1.msra.mxu1 %v746_v30  ;;  %v638_v32 = vpop.permute.xlu1 %637  ;;  %vm1656_vm3 = vmmov %vm1655_vm1 }
 0x21d   :  { %v644_v33 = vsel %vm1647_vm7, %v638_v32, %v640_v27  ;;  %v645_v34 = vsel %vm1648_vm9, %v636_v11, %v638_v32  ;;  %vm1658_vm7 = vcmp.ge.s32.totalorder %v1177_v16, 1  ;;  %vm1659_vm9 = vmmov %vm1655_vm1 }
 0x21e   :  { %v612_v0 = vpop.permute.xlu0 %611  ;;  %v647_v35 = vsel %vm1649_vm0, %v645_v34, 0.0  ;;  %v648_v53 = vsel %vm1650_vm4, %v644_v33, 0.0  ;;  %v741_v36 = vld [vmem:[#allocation2 + $0x88] sm:$0xff]  ;;  %vm1660_vm0 = vmmov %vm1655_vm1  ;;  %vm1661_vm4 = vcmp.ge.s32.totalorder %v1199_v23, 1 }
 0x21f   :  { %v740_v37 = vld [vmem:[#allocation2 + $0xa8] sm:$0xff]  ;;  %651 = vst [vmem:[#allocation2 + $0x70] sm:$0xf] %v647_v35  ;;  %652 = vst [vmem:[#allocation2 + $0x58] sm:$0xf] %v648_v53  ;;  %779 = vmatprep.subr.mxu0 %v741_v36 }
 0x220   :  { %780 = vmatpush1.msra.mxu0 %v740_v37  ;;  %v642_v38 = vpop.permute.xlu1 %641 }
 0x221   :  { %v643_v39 = vsel %vm1651_vm14, %v640_v27, %v642_v38  ;;  %v646_v40 = vsel %vm1652_vm6, %v642_v38, %v636_v11  ;;  %vm1662_vm14 = vcmp.ge.s32.totalorder %v1173_v14, 1  ;;  %vm1663_vm6 = vcmp.lt.s32.totalorder %v1165_v8, 15 }
 0x222   :  { %v616_v41 = vpop.permute.xlu0 %615  ;;  %v649_v42 = vsel %vm1653_vm13, %v643_v39, 0.0  ;;  %v650_v43 = vsel %vm1654_vm5, %v646_v40, 0.0  ;;  %v743_v44 = vld [vmem:[#allocation2 + $0xc0] sm:$0xff]  ;;  %v742_v45 = vld [vmem:[#allocation2 + $0xd8] sm:$0xff]  ;;  %vm1664_vm13 = vmmov %vm1663_vm6  ;;  %vm1665_vm5 = vcmp.lt.s32.totalorder %v1185_v21, 15 }
 0x223   :  { %653 = vst [vmem:[#allocation2 + $0xe0] sm:$0xf] %v649_v42  ;;  %654 = vst [vmem:[#allocation2 + $0x60] sm:$0xf] %v650_v43  ;;  %850 = vmatprep.subr.mxu1 %v743_v44 }
 0x224   :  { %851 = vmatpush1.msra.mxu1 %v742_v45  ;;  %v614_v46 = vpop.permute.xlu1 %613 }
 0x225   :  { %v620_v47 = vsel %vm1655_vm1, %v614_v46, %v616_v41  ;;  %v621_v50 = vsel %vm1656_vm3, %v612_v0, %v614_v46  ;;  %vm1666_vm1 = vmmov %vm1663_vm6 }
 0x226   :  { %v592_v31 = vpop.permute.xlu0 %591  ;;  %v624_v51 = vsel %vm1657_vm2, %v621_v50, 0.0  ;;  %v625_v52 = vsel %vm1658_vm7, %v620_v47, 0.0  ;;  %v737_v54 = vld [vmem:[#allocation2 + $0x58] sm:$0xff]  ;;  %v736_v56 = vld [vmem:[#allocation2 + $0x70] sm:$0xff]  ;;  %vm1667_vm3 = vmmov %vm1666_vm1  ;;  %vm1668_vm2 = vcmp.lt.s32.totalorder %v1173_v14, 15 }
 0x227   :  { %628 = vst [vmem:[#allocation2 + $0x38] sm:$0xf] %v624_v51  ;;  %629 = vst [vmem:[#allocation2 + $0x8] sm:$0xf] %v625_v52  ;;  %781 = vmatprep.subr.mxu0 %v737_v54 }
 0x228   :  { %782 = vmatpush1.msra.mxu0 %v736_v56  ;;  %v618_v57 = vpop.permute.xlu1 %617 }
 0x229   :  { %v619_v22 = vsel %vm1659_vm9, %v616_v41, %v618_v57  ;;  %v622_v60 = vsel %vm1660_vm0, %v618_v57, %v612_v0  ;;  %783 = vmatprep.subr.mxu0 %v733_v59 }
 0x22a   :  { %v596_v61 = vpop.permute.xlu0 %595  ;;  %v623_v16 = vsel %vm1661_vm4, %v622_v60, 0.0  ;;  %v626_v17 = vsel %vm1662_vm14, %v619_v22, 0.0  ;;  %784 = vmatpush1.msra.mxu0 %v732_v63  ;;  %v739_v26 = vld [vmem:[#allocation2 + $0x60] sm:$0xff]  ;;  %vm1675_vm4 = vcmp.ge.s32.totalorder %v1185_v21, 1 }
 0x22b   :  { %v738_v5 = vld [vmem:[#allocation2 + $0xe0] sm:$0xff]  ;;  %627 = vst [vmem:[#allocation2 + $0xf8] sm:$0xf] %v623_v16  ;;  %630 = vst [vmem:[#allocation2 + $0x78] sm:$0xf] %v626_v17  ;;  %852 = vmatprep.subr.mxu1 %v739_v26 }
 0x22c   :  { %853 = vmatpush1.msra.mxu1 %v738_v5  ;;  %v594_v6 = vpop.permute.xlu1 %593 }
 0x22d   :  { %v600_v9 = vsel %vm1663_vm6, %v594_v6, %v596_v61  ;;  %v601_v11 = vsel %vm1664_vm13, %v592_v31, %v594_v6  ;;  %854 = vmatprep.subr.mxu1 %v735_v7  ;;  %vm1678_vm6 = vnez %v1626_v48  ;;  %vm1679_vm13 = vcmp.ge.s32.totalorder %v1173_v14, 1 }
 0x22e   :  { %v572_v23 = vpop.permute.xlu0 %571  ;;  %v604_v20 = vsel %vm1665_vm5, %v601_v11, 0.0  ;;  %v605_v15 = vsel %vm1344_vm11, %v600_v9, 0.0  ;;  %855 = vmatpush1.msra.mxu1 %v734_v12  ;;  %v729_v18 = vld [vmem:[#allocation2 + $0x38] sm:$0xff]  ;;  %v730_v30 = vld [vmem:[#allocation2 + $0x8] sm:$0xff]  ;;  %vm1669_vm11 = vcmp.lt.s32.totalorder %v1165_v8, 16 }
 0x22f   :  { %608 = vst [vmem:[#allocation2 + $0x110] sm:$0xf] %v604_v20  ;;  %609 = vst [vmem:[#allocation2 + $0x118] sm:$0xf] %v605_v15  ;;  %785 = vmatprep.subr.mxu0 %v729_v18 }
 0x230   :  { %v598_v19 = vpop.permute.xlu1 %597  ;;  %vm1670_vm7 = vmmov %vm1669_vm11 }
 0x231   :  { %v599_v24 = vsel %vm1666_vm1, %v596_v61, %v598_v19  ;;  %v602_v25 = vsel %vm1667_vm3, %v598_v19, %v592_v31  ;;  %vm1672_vm9 = vmmov %vm1670_vm7 }
 0x232   :  { %v576_v27 = vpop.permute.xlu0 %575  ;;  %v603_v28 = vsel %vm1336_vm15, %v602_v25, 0.0  ;;  %v606_v13 = vsel %vm1668_vm2, %v599_v24, 0.0  ;;  %v728_v55 = vld [vmem:[#allocation2 + $0xf8] sm:$0xff]  ;;  %vm1671_vm15 = vmmov %vm1670_vm7 }
 0x233   :  { %v731_v29 = vld [vmem:[#allocation2 + $0x78] sm:$0xff]  ;;  %607 = vst [vmem:[#allocation2 + $0x80] sm:$0xf] %v603_v28  ;;  %610 = vst [vmem:[#allocation2 + $0x98] sm:$0xf] %v606_v13  ;;  %786 = vmatpush1.msra.mxu0 %v728_v55 }
 0x234   :  { %856 = vmatprep.subr.mxu1 %v731_v29  ;;  %v574_v32 = vpop.permute.xlu1 %573 }
 0x235   :  { %857 = vmatpush1.msra.mxu1 %v730_v30  ;;  %v580_v33 = vsel %vm1669_vm11, %v574_v32, %v576_v27  ;;  %v581_v34 = vsel %vm1670_vm7, %v572_v23, %v574_v32 }
 0x236   :  { %v585_v10 = vsel %vm1324_vm12, %v580_v33, 0.0  ;;  %588 = vst [vmem:[#allocation2 + $0x68] sm:$0xf] %v581_v34  ;;  %v552_v0 = vpop.permute.xlu0 %551  ;;  %v725_v35 = vld [vmem:[#allocation2 + $0x110] sm:$0xff]  ;;  %v726_v62 = vld [vmem:[#allocation2 + $0x118] sm:$0xff]  ;;  %vm1673_vm12 = vcmp.lt.s32.totalorder %v1165_v8, 17 }
 0x237   :  { %589 = vst [vmem:[#allocation2 + $0x30] sm:$0xf] %v585_v10  ;;  %787 = vmatprep.subr.mxu0 %v725_v35  ;;  %vm1674_vm0 = vmmov %vm1673_vm12  ;;  %v715_v8 = vld [vmem:[%s1583_s3] sm:$0xf]  ;;  %s1010_s3 = smov [#allocation6]  }
 0x238   :  { %v578_v53 = vpop.permute.xlu1 %577  ;;  %vm1677_vm14 = vmmov %vm1674_vm0  ;;  %s927_s10 = sshll.u32 %s1010_s3, 4  ;;  %s928_s10 = int_to_ptr.vmem [resolvable:$true] %s927_s10 }
 0x239   :  { %v579_v36 = vsel %vm1671_vm15, %v576_v27, %v578_v53  ;;  %v582_v37 = vsel %vm1672_vm9, %v578_v53, %v572_v23  ;;  %s975_s11 = scalar_lea.vmem %s928_s10, 256  ;;  %p980_p6 = scmp.lt.s32.totalorder %s928_s10, %s928_s10 }
 0x23a   :  { %v583_v38 = vsel %vm1318_vm10, %v582_v37, 0.0  ;;  %590 = vst [vmem:[#allocation2 + $0x18] sm:$0xf] %v579_v36  ;;  %v724_v39 = vld [vmem:[#allocation2 + $0x80] sm:$0xff]  ;;  %v727_v40 = vld [vmem:[#allocation2 + $0x98] sm:$0xff]  ;;  %v556_v41 = vpop.permute.xlu0 %555  ;;  %vm1676_vm10 = vmmov %vm1674_vm0  ;;  %p976_p5 = scmp.ne.s32.totalorder %s928_s10, %s975_s11  ;;  %p981_p7 = scmp.lt.s32.totalorder %s975_s11, %s975_s11 }
 0x23b   :  { %587 = vst [vmem:[#allocation2 + $0x108] sm:$0xf] %v583_v38  ;;  %788 = vmatpush1.msra.mxu0 %v724_v39  ;;  %858 = vmatprep.subr.mxu1 %v727_v40 }
 0x23c   :  { %859 = vmatpush1.msra.mxu1 %v726_v62  ;;  %v554_v42 = vpop.permute.xlu1 %553  ;;  %p982_p8 = por %p981_p7, %p980_p6 }
 0x23d   :  { %v560_v43 = vsel %vm1673_vm12, %v554_v42, %v556_v41  ;;  %v561_v44 = vsel %vm1674_vm0, %v552_v0, %v554_v42  ;;  %v721_v45 = vld [vmem:[#allocation2 + $0x68] sm:$0xff] }
 0x23e   :  { %v564_v58 = vsel %vm1675_vm4, %v561_v44, 0.0  ;;  %v565_v46 = vsel %vm1390_vm8, %v560_v43, 0.0  ;;  %789 = vmatprep.subr.mxu0 %v721_v45  ;;  %v722_v54 = vld [vmem:[#allocation2 + $0x30] sm:$0xff]  ;;  %vm1680_vm8 = vcmask 588800   ;;  %p983_p9 = pnand %p982_p8, %p976_p5 }
 0x23f   :  { %568 = vst [vmem:[#allocation2 + $0xd0] sm:$0xf] %v564_v58  ;;  %569 = vst [vmem:[#allocation2 + $0x10] sm:$0xf] %v565_v46 }
 0x240   :  { %v558_v47 = vpop.permute.xlu1 %557  ;;  %vm1681_vm5 = vmmov %vm1680_vm8 }
 0x241   :  { %v559_v50 = vsel %vm1676_vm10, %v556_v41, %v558_v47  ;;  %v562_v31 = vsel %vm1677_vm14, %v558_v47, %v552_v0  ;;  %v723_v51 = vld [vmem:[#allocation2 + $0x18] sm:$0xff] }
 0x242   :  { %v563_v52 = vsel %vm1678_vm6, %v562_v31, 0.0  ;;  %v566_v21 = vsel %vm1679_vm13, %v559_v50, 0.0  ;;  %860 = vmatprep.subr.mxu1 %v723_v51  ;;  %v720_v49 = vld [vmem:[#allocation2 + $0x108] sm:$0xff] }
 0x243   :  { %567 = vst [vmem:[#allocation2 + $0xb0] sm:$0xf] %v563_v52  ;;  %570 = vst [vmem:[#allocation2 + $0x48] sm:$0xf] %v566_v21  ;;  %790 = vmatpush1.msra.mxu0 %v720_v49  ;;  %861 = vmatpush1.msra.mxu1 %v722_v54 }
 0x246   :  { %v717_v56 = vld [vmem:[#allocation2 + $0xd0] sm:$0xff] }
 0x247   :  { %791 = vmatprep.subr.mxu0 %v717_v56  ;;  %v718_v48 = vld [vmem:[#allocation2 + $0x10] sm:$0xff]  ;;  %v756_v14 = vpop.permute.xlu0 %755 }
 0x24a   :  { %v716_v57 = vld [vmem:[#allocation2 + $0xb0] sm:$0xff]  ;;  %v719_v59 = vld [vmem:[#allocation2 + $0x48] sm:$0xff] }
 0x24b   :  { %792 = vmatpush1.msra.mxu0 %v716_v57  ;;  %862 = vmatprep.subr.mxu1 %v719_v59 }
 0x24c   :  { %938 = vmatmul.mubr.msk.f32.vlgmr.msra.gmra.mxu0 %vm1680_vm8, %v715_v8  ;;  %863 = vmatpush1.msra.mxu1 %v718_v48 }
 0x24d   :  { %939 = vmatmul.mubr.msk.f32.vlgmr.msra.gmra.mxu1 %vm1681_vm5, %v715_v8 }
 0x30c   :  { %v827_v22 = vpop.f32.mrf.mxu0 }
 0x30d   :  { %v828_v60 = vadd.f32 %v827_v22, %v756_v14  ;;  %v898_v61 = vpop.f32.mrf.mxu1 }
 0x30e   :  { %v899_v63 = vadd.f32 %v898_v61, %v756_v14  ;;  %v829_v16 = vpop.f32.mrf.mxu0 }
 0x30f   :  { %v903_v17 = vadd.f32 %v828_v60, %v1084_v2  ;;  %v830_v26 = vadd.f32 %v829_v16, %v756_v14  ;;  %v900_v5 = vpop.f32.mrf.mxu1 }
 0x310   :  { %v905_v6 = vadd.f32 %v899_v63, %v1082_v1  ;;  %v901_v7 = vadd.f32 %v900_v5, %v756_v14 }
 0x311   :  { %v904_v9 = vadd.f32 %v830_v26, %v1098_v4  ;;  %v907_v23 = vmax.f32 %v903_v17, 0.0 }
 0x312   :  { %v906_v11 = vadd.f32 %v901_v7, %v1094_v3  ;;  %v909_v20 = vmax.f32 %v905_v6, 0.0 }
 0x313   :  { %v908_v12 = vmax.f32 %v904_v9, 0.0 }
 0x314   :  { %v910_v15 = vmax.f32 %v906_v11, 0.0 }
 0x315   :  { %v915_v18 = vcombine.low %v907_v23, %v908_v12 }
 0x316   :  { %v916_v19 = vcombine.low %v909_v20, %v910_v15 }
 0x317   :  { %919 = vst [vmem:[#allocation6] sm:$0xff] %v915_v18 }
 0x318   :  { %920 = vst [vmem:[#allocation6 + $0x8] sm:$0xff] %v916_v19 }
 0x319   :  { %986 = shalt.err (!%p983_p9)
}
 0x31a   :  { %930 = dma.vmem_to_hbm [thread:$0]  %s928_s10, 256, %s1585_s5, [#allocation5]  }
 0x31b   :  { %997 = dma.done.wait [#allocation5], 256  }
 0x31c   :  { %998 = vsyncadd [#allocation5], 4294967040 }
 0x31d   :  { %934 = vsyncpa [#allocation4], 1 }
 0x31e   :  { %935 = vsyncpa [#allocation5], 1 }

</bundles_post_ra>
